<compile_context>
chip_gen: v7x
topology: tpu7x:2x2x1
jax: 0.10.0
libtpu: 0.0.40
codegen_flags: <defaults>
</compile_context>

<pallas_src>
import functools

import jax
import jax.numpy as jnp
from jax.experimental import pallas as pl
from jax.experimental.pallas import tpu as pltpu


def _round_up(x, m):
    return (x + m - 1) // m * m


def _pick_tile(n_pad, max_tile=512):
    """Largest 128-multiple divisor of n_pad that is <= max_tile."""
    best = 128
    t = 128
    while t <= min(n_pad, max_tile):
        if n_pad % t == 0:
            best = t
        t += 128
    return best


def _vmem_limit(est_bytes):
    # Floor at the 32 MiB scoped default; cap well under v7x's 64 MiB physical VMEM.
    return int(min(max(est_bytes + (8 << 20), 32 << 20), 56 << 20))


# ---------------------------------------------------------------------------
# Layer 1 (reassociated, in_dim <= hidden):
#   acc = sum_k A[i,k] @ X[k] ; z = relu(acc @ W1^T + b1) @ W2^T
# ---------------------------------------------------------------------------
def _conv1_reassoc_kernel(a_ref, x_ref, w1t_ref, b1_ref, w2t_ref, z_ref, acc_ref,
                          *, tile, x_resident):
    k = pl.program_id(1)

    @pl.when(k == 0)
    def _():
        acc_ref[...] = jnp.zeros_like(acc_ref)

    if x_resident:
        # X lives fully in VMEM (constant index_map -> fetched once); slice the k rows.
        xk = x_ref[pl.ds(pl.multiple_of(k * tile, tile), tile), :]
    else:
        xk = x_ref[...]
    acc_ref[...] += jnp.dot(a_ref[...], xk, preferred_element_type=jnp.float32)

    @pl.when(k == pl.num_programs(1) - 1)
    def _():
        h = jnp.dot(acc_ref[...], w1t_ref[...], preferred_element_type=jnp.float32)
        h = jnp.maximum(h + b1_ref[...], 0.0)
        # dropout p=0.0 -> identity
        z_ref[...] = jnp.dot(h, w2t_ref[...],
                             preferred_element_type=jnp.float32).astype(z_ref.dtype)


# ---------------------------------------------------------------------------
# Layer 1 (original association, used when in_dim > hidden):
#   acc = sum_k A[i,k] @ (X @ W1^T)[k] ; z = relu(acc + b1) @ W2^T
# ---------------------------------------------------------------------------
def _conv1_prefolded_kernel(a_ref, xw1_ref, b1_ref, w2t_ref, z_ref, acc_ref,
                            *, tile, x_resident):
    k = pl.program_id(1)

    @pl.when(k == 0)
    def _():
        acc_ref[...] = jnp.zeros_like(acc_ref)

    if x_resident:
        xw1k = xw1_ref[pl.ds(pl.multiple_of(k * tile, tile), tile), :]
    else:
        xw1k = xw1_ref[...]
    acc_ref[...] += jnp.dot(a_ref[...], xw1k, preferred_element_type=jnp.float32)

    @pl.when(k == pl.num_programs(1) - 1)
    def _():
        h = jnp.maximum(acc_ref[...] + b1_ref[...], 0.0)
        z_ref[...] = jnp.dot(h, w2t_ref[...],
                             preferred_element_type=jnp.float32).astype(z_ref.dtype)


# ---------------------------------------------------------------------------
# Layer 2: out = A_hat @ z + b2   (z = h @ W2^T already, lane-dense width 128)
# ---------------------------------------------------------------------------
def _conv2_kernel(a_ref, z_ref, b2_ref, o_ref, acc_ref, *, tile, z_resident):
    k = pl.program_id(1)

    @pl.when(k == 0)
    def _():
        acc_ref[...] = jnp.zeros_like(acc_ref)

    if z_resident:
        zk = z_ref[pl.ds(pl.multiple_of(k * tile, tile), tile), :]
    else:
        zk = z_ref[...]
    acc_ref[...] += jnp.dot(a_ref[...], zk, preferred_element_type=jnp.float32)

    @pl.when(k == pl.num_programs(1) - 1)
    def _():
        o_ref[...] = acc_ref[...] + b2_ref[0]  # b2 scalar from SMEM


def gcn_forward(a_hat, x, w1, b1, w2, b2, *, max_tile=512, compute_dtype=jnp.float32):
    """Two-layer GCN forward.

    a_hat may be passed either as (n, n) or already padded to (n_pad, n_pad)
    (preferred: avoids an extra full N^2 pad copy in HBM).
    compute_dtype is the streaming dtype for A_hat / X / z (f32 or bf16);
    weights, biases and the MXU accumulator stay f32.
    """
    n, in_dim = x.shape
    hidden = w1.shape[0]

    f32 = jnp.float32
    n_pad = _round_up(n, 128)
    fp = _round_up(in_dim, 128)   # lane-dense feature width
    hp = _round_up(hidden, 128)   # lane-dense hidden width
    cp = 128                      # class dim 1 -> padded to full lane width
    it = jnp.dtype(compute_dtype).itemsize

    # ---- operand prep (no N^2 pad copy when a_hat is pre-padded) ---------
    if a_hat.shape == (n_pad, n_pad):
        a_p = a_hat
    elif a_hat.shape == (n, n):
        a_p = jnp.pad(a_hat, ((0, n_pad - n), (0, n_pad - n)))
    else:
        raise ValueError(f"a_hat must be ({n},{n}) or ({n_pad},{n_pad}), got {a_hat.shape}")
    if a_p.dtype != compute_dtype:
        a_p = a_p.astype(compute_dtype)

    x_p = jnp.pad(x.astype(compute_dtype), ((0, n_pad - n), (0, fp - in_dim)))
    w1t_p = jnp.pad(w1.T.astype(f32), ((0, fp - in_dim), (0, hp - hidden)))
    b1_p = jnp.pad(jnp.reshape(b1, (1, hidden)).astype(f32), ((0, 0), (0, hp - hidden)))
    w2t_p = jnp.pad(w2.T.astype(f32), ((0, hp - hidden), (0, cp - w2.shape[0])))
    b2_s = jnp.asarray(b2, f32).reshape((1,))  # SMEM scalar

    tile = _pick_tile(n_pad, max_tile)
    grid = (n_pad // tile, n_pad // tile)
    a_spec = pl.BlockSpec((tile, tile), lambda i, k: (i, k))
    cdims = ("parallel", "arbitrary")
    resident_budget = 24 << 20  # per resident operand, incl. its 2 pipeline buffers

    # ---- layer 1 (+ fused h @ W2^T) -------------------------------------
    if in_dim <= hidden:
        x_resident = 2 * n_pad * fp * it <= resident_budget
        x_spec = (pl.BlockSpec((n_pad, fp), lambda i, k: (0, 0)) if x_resident
                  else pl.BlockSpec((tile, fp), lambda i, k: (k, 0)))
        est1 = (2 * tile * tile * it
                + 2 * (n_pad if x_resident else tile) * fp * it
                + 2 * (fp * hp + 8 * hp + hp * cp) * 4
                + 2 * tile * cp * it
                + tile * fp * 4)
        z = pl.pallas_call(
            functools.partial(_conv1_reassoc_kernel, tile=tile, x_resident=x_resident),
            out_shape=jax.ShapeDtypeStruct((n_pad, cp), compute_dtype),
            grid=grid,
            in_specs=[
                a_spec,
                x_spec,
                pl.BlockSpec((fp, hp), lambda i, k: (0, 0)),
                pl.BlockSpec((1, hp), lambda i, k: (0, 0)),
                pl.BlockSpec((hp, cp), lambda i, k: (0, 0)),
            ],
            out_specs=pl.BlockSpec((tile, cp), lambda i, k: (i, 0)),
            scratch_shapes=[pltpu.VMEM((tile, fp), f32)],
            compiler_params=pltpu.CompilerParams(
                dimension_semantics=cdims, vmem_limit_bytes=_vmem_limit(est1)),
        )(a_p, x_p, w1t_p, b1_p, w2t_p)
    else:
        # X @ W1^T is the cheaper association here; fold it once in XLA (f32).
        xw1_p = jnp.dot(x_p.astype(f32), w1t_p).astype(compute_dtype)
        xw1_resident = 2 * n_pad * hp * it <= resident_budget
        xw1_spec = (pl.BlockSpec((n_pad, hp), lambda i, k: (0, 0)) if xw1_resident
                    else pl.BlockSpec((tile, hp), lambda i, k: (k, 0)))
        est1 = (2 * tile * tile * it
                + 2 * (n_pad if xw1_resident else tile) * hp * it
                + 2 * (8 * hp + hp * cp) * 4
                + 2 * tile * cp * it
                + tile * hp * 4)
        z = pl.pallas_call(
            functools.partial(_conv1_prefolded_kernel, tile=tile, x_resident=xw1_resident),
            out_shape=jax.ShapeDtypeStruct((n_pad, cp), compute_dtype),
            grid=grid,
            in_specs=[
                a_spec,
                xw1_spec,
                pl.BlockSpec((1, hp), lambda i, k: (0, 0)),
                pl.BlockSpec((hp, cp), lambda i, k: (0, 0)),
            ],
            out_specs=pl.BlockSpec((tile, cp), lambda i, k: (i, 0)),
            scratch_shapes=[pltpu.VMEM((tile, hp), f32)],
            compiler_params=pltpu.CompilerParams(
                dimension_semantics=cdims, vmem_limit_bytes=_vmem_limit(est1)),
        )(a_p, xw1_p, b1_p, w2t_p)

    # ---- layer 2 ---------------------------------------------------------
    z_resident = 2 * n_pad * cp * it <= resident_budget
    z_spec = (pl.BlockSpec((n_pad, cp), lambda i, k: (0, 0)) if z_resident
              else pl.BlockSpec((tile, cp), lambda i, k: (k, 0)))
    est2 = (2 * tile * tile * it
            + 2 * (n_pad if z_resident else tile) * cp * it
            + 2 * tile * cp * 4
            + tile * cp * 4)
    out_p = pl.pallas_call(
        functools.partial(_conv2_kernel, tile=tile, z_resident=z_resident),
        out_shape=jax.ShapeDtypeStruct((n_pad, cp), f32),
        grid=grid,
        in_specs=[
            a_spec,
            z_spec,
            pl.BlockSpec(memory_space=pltpu.MemorySpace.SMEM),
        ],
        out_specs=pl.BlockSpec((tile, cp), lambda i, k: (i, 0)),
        scratch_shapes=[pltpu.VMEM((tile, cp), f32)],
        compiler_params=pltpu.CompilerParams(
            dimension_semantics=cdims, vmem_limit_bytes=_vmem_limit(est2)),
    )(a_p, z, b2_s)

    # x.squeeze(): keep real rows, class column 0
    return out_p[:n, 0]


def build_normalized_adjacency(edge_index, num_nodes, pad_to=None):
    """Dense A_hat = D^{-1/2} (A + I) D^{-1/2}, matching PyG gcn_norm.

    If pad_to is given, the matrix is built directly at (pad_to, pad_to) so the
    kernel wrapper never needs to make a padded copy (padded rows/cols are zero).
    """
    size = num_nodes if pad_to is None else pad_to
    src, dst = edge_index[0], edge_index[1]
    loop = jnp.arange(num_nodes, dtype=src.dtype)
    src = jnp.concatenate([src, loop])
    dst = jnp.concatenate([dst, loop])
    ew = jnp.ones(src.shape[0], dtype=jnp.float32)
    deg = jnp.zeros((num_nodes,), jnp.float32).at[dst].add(ew)
    dinv = jnp.where(deg > 0, jax.lax.rsqrt(deg), 0.0)
    norm = dinv[src] * dinv[dst] * ew
    # out[dst] += norm * x[src]  ->  A_hat[dst, src] = norm
    return jnp.zeros((size, size), jnp.float32).at[dst, src].add(norm)


def init_params(key, in_dim, hidden_dim):
    """kaiming_normal_ (fan_in, gain=sqrt(2)) on lin weights; biases = 0."""
    k1, k2 = jax.random.split(key)
    w1 = jax.random.normal(k1, (hidden_dim, in_dim), jnp.float32) * jnp.sqrt(2.0 / in_dim)
    b1 = jnp.zeros((hidden_dim,), jnp.float32)
    w2 = jax.random.normal(k2, (1, hidden_dim), jnp.float32) * jnp.sqrt(2.0 / hidden_dim)
    b2 = jnp.zeros((1,), jnp.float32)
    return w1, b1, w2, b2


def _ring_edges(n):
    """Deterministic undirected ring graph (both directions listed)."""
    idx = jnp.arange(n, dtype=jnp.int32)
    nxt = (idx + 1) % n
    return jnp.stack([jnp.concatenate([idx, nxt]), jnp.concatenate([nxt, idx])], axis=0)


def _reference(a_hat_unpadded, x, w1, b1, w2, b2):
    """Pure-JAX reference with the PyTorch association order."""
    h = jnp.maximum(a_hat_unpadded @ (x @ w1.T) + b1, 0.0)
    return (a_hat_unpadded @ (h @ w2.T) + b2)[:, 0]


if __name__ == "__main__":
    key = jax.random.PRNGKey(0)

    # ---- case 1: in_dim <= hidden (reassociated layer-1 path), f32 --------
    num_nodes, in_dim, hidden_dim = 300, 16, 128
    k1, k2, k3, k4 = jax.random.split(key, 4)
    x = jax.random.normal(k1, (num_nodes, in_dim), jnp.float32)
    edge_index = _ring_edges(num_nodes)                       # (2, 2*N)
    n_pad = _round_up(num_nodes, 128)
    a_hat = build_normalized_adjacency(edge_index, num_nodes, pad_to=n_pad)
    w1, b1, w2, b2 = init_params(k2, in_dim, hidden_dim)

    out = gcn_forward(a_hat, x, w1, b1, w2, b2)
    jax.block_until_ready(out)

    ref = _reference(a_hat[:num_nodes, :num_nodes], x, w1, b1, w2, b2)
    assert out.shape == (num_nodes,)
    assert jnp.allclose(out, ref, atol=1e-3, rtol=1e-3), float(jnp.max(jnp.abs(out - ref)))

    # bf16 streaming of A_hat / X / z (f32 accumulation) -> halves HBM traffic.
    out_bf16 = gcn_forward(a_hat, x, w1, b1, w2, b2, compute_dtype=jnp.bfloat16)
    jax.block_until_ready(out_bf16)
    assert jnp.allclose(out_bf16, ref, atol=5e-2, rtol=5e-2), \
        float(jnp.max(jnp.abs(out_bf16 - ref)))

    # ---- case 2: in_dim > hidden (prefolded layer-1 path), f32 ------------
    n2, in2, hid2 = 200, 160, 64
    x2 = jax.random.normal(k3, (n2, in2), jnp.float32)
    ei2 = _ring_edges(n2)
    a2 = build_normalized_adjacency(ei2, n2, pad_to=_round_up(n2, 128))
    w1b, b1b, w2b, b2b = init_params(k4, in2, hid2)

    out2 = gcn_forward(a2, x2, w1b, b1b, w2b, b2b)
    jax.block_until_ready(out2)
    ref2 = _reference(a2[:n2, :n2], x2, w1b, b1b, w2b, b2b)
    assert out2.shape == (n2,)
    assert jnp.allclose(out2, ref2, atol=1e-3, rtol=1e-3), \
        float(jnp.max(jnp.abs(out2 - ref2)))

    print("KERNEL_OK")
</pallas_src>

<mosaic_0001>
module attributes {stable_mosaic.version = 11 : i64} {
  func.func @_conv1_reassoc_kernel(%arg0: i32, %arg1: i32, %arg2: memref<384x384xf32, #tpu.memory_space<vmem>>, %arg3: memref<384x128xf32, #tpu.memory_space<vmem>>, %arg4: memref<128x128xf32, #tpu.memory_space<vmem>>, %arg5: memref<1x128xf32, #tpu.memory_space<vmem>>, %arg6: memref<128x128xf32, #tpu.memory_space<vmem>>, %arg7: memref<384x128xf32, #tpu.memory_space<vmem>>, %arg8: memref<384x128xf32, #tpu.memory_space<vmem>>) attributes {dimension_semantics = [#tpu.dimension_semantics<parallel>, #tpu.dimension_semantics<arbitrary>], iteration_bounds = array<i64: 1, 1>, scalar_prefetch = 0 : i64, scratch_operands = 1 : i64, tpu.core_type = #tpu.core_type<tc>, window_params = [{transform_indices = @transform_0, window_bounds = array<i64: 384, 384>}, {pipeline_mode = #tpu.pipeline_mode<synchronous>, transform_indices = @transform_1, window_bounds = array<i64: 384, 128>}, {pipeline_mode = #tpu.pipeline_mode<synchronous>, transform_indices = @transform_2, window_bounds = array<i64: 128, 128>}, {pipeline_mode = #tpu.pipeline_mode<synchronous>, transform_indices = @transform_3, window_bounds = array<i64: 1, 128>}, {pipeline_mode = #tpu.pipeline_mode<synchronous>, transform_indices = @transform_4, window_bounds = array<i64: 128, 128>}, {transform_indices = @transform_5, window_bounds = array<i64: 384, 128>}]} {
    %c0_i32 = arith.constant 0 : i32
    %0 = arith.cmpi eq, %arg1, %c0_i32 : i32
    %1 = arith.extui %0 : i1 to i32
    %c0_i32_0 = arith.constant 0 : i32
    %2 = arith.cmpi ne, %1, %c0_i32_0 : i32
    scf.if %2 {
      %cst_9 = arith.constant 0.000000e+00 : f32
      %15 = vector.broadcast %cst_9 : f32 to vector<384x128xf32>
      %c0_10 = arith.constant 0 : index
      %c0_11 = arith.constant 0 : index
      %16 = vector.load %arg8[%c0_10, %c0_11] : memref<384x128xf32, #tpu.memory_space<vmem>>, vector<384x128xf32>
      tpu.vector_store %arg8[%c0_10, %c0_11], %15 {strides = array<i32>} : memref<384x128xf32, #tpu.memory_space<vmem>>, vector<384x128xf32>,
    } else {
    }
    %c384_i32 = arith.constant 384 : i32
    %3 = arith.muli %arg1, %c384_i32 : i32
    %4 = tpu.assume_multiple %3, 384 : i32
    %5 = arith.index_cast %4 : i32 to index
    %c0 = arith.constant 0 : index
    %6 = vector.load %arg3[%5, %c0] : memref<384x128xf32, #tpu.memory_space<vmem>>, vector<384x128xf32>
    %c0_1 = arith.constant 0 : index
    %c0_2 = arith.constant 0 : index
    %7 = vector.load %arg8[%c0_1, %c0_2] : memref<384x128xf32, #tpu.memory_space<vmem>>, vector<384x128xf32>
    %c0_3 = arith.constant 0 : index
    %c0_4 = arith.constant 0 : index
    %8 = vector.load %arg2[%c0_3, %c0_4] : memref<384x384xf32, #tpu.memory_space<vmem>>, vector<384x384xf32>
    %cst = arith.constant dense<0.000000e+00> : vector<384x128xf32>
    %9 = tpu.matmul %8, %6, %cst {dimension_numbers = #tpu.dot_dimension_numbers<[1], [0], [0], [1], [0, 0, 1, 1], [], []>} : vector<384x384xf32>, vector<384x128xf32>, vector<384x128xf32> -> vector<384x128xf32>
    %10 = arith.addf %7, %9 : vector<384x128xf32>
    %c0_5 = arith.constant 0 : index
    %c0_6 = arith.constant 0 : index
    %11 = vector.load %arg8[%c0_5, %c0_6] : memref<384x128xf32, #tpu.memory_space<vmem>>, vector<384x128xf32>
    tpu.vector_store %arg8[%c0_5, %c0_6], %10 {strides = array<i32>} : memref<384x128xf32, #tpu.memory_space<vmem>>, vector<384x128xf32>,
    %c0_i32_7 = arith.constant 0 : i32
    %12 = arith.cmpi eq, %arg1, %c0_i32_7 : i32
    %13 = arith.extui %12 : i1 to i32
    %c0_i32_8 = arith.constant 0 : i32
    %14 = arith.cmpi ne, %13, %c0_i32_8 : i32
    scf.if %14 {
      %c0_9 = arith.constant 0 : index
      %c0_10 = arith.constant 0 : index
      %15 = vector.load %arg8[%c0_9, %c0_10] : memref<384x128xf32, #tpu.memory_space<vmem>>, vector<384x128xf32>
      %c0_11 = arith.constant 0 : index
      %c0_12 = arith.constant 0 : index
      %16 = vector.load %arg4[%c0_11, %c0_12] : memref<128x128xf32, #tpu.memory_space<vmem>>, vector<128x128xf32>
      %cst_13 = arith.constant dense<0.000000e+00> : vector<384x128xf32>
      %17 = tpu.matmul %15, %16, %cst_13 {dimension_numbers = #tpu.dot_dimension_numbers<[1], [0], [0], [1], [0, 0, 1, 1], [], []>} : vector<384x128xf32>, vector<128x128xf32>, vector<384x128xf32> -> vector<384x128xf32>
      %c0_14 = arith.constant 0 : index
      %c0_15 = arith.constant 0 : index
      %18 = vector.load %arg5[%c0_14, %c0_15] : memref<1x128xf32, #tpu.memory_space<vmem>>, vector<1x128xf32>
      %19 = vector.broadcast %18 : vector<1x128xf32> to vector<384x128xf32>
      %20 = arith.addf %17, %19 : vector<384x128xf32>
      %cst_16 = arith.constant 0.000000e+00 : f32
      %21 = vector.broadcast %cst_16 : f32 to vector<384x128xf32>
      %22 = arith.maximumf %20, %21 : vector<384x128xf32>
      %c0_17 = arith.constant 0 : index
      %c0_18 = arith.constant 0 : index
      %23 = vector.load %arg6[%c0_17, %c0_18] : memref<128x128xf32, #tpu.memory_space<vmem>>, vector<128x128xf32>
      %cst_19 = arith.constant dense<0.000000e+00> : vector<384x128xf32>
      %24 = tpu.matmul %22, %23, %cst_19 {dimension_numbers = #tpu.dot_dimension_numbers<[1], [0], [0], [1], [0, 0, 1, 1], [], []>} : vector<384x128xf32>, vector<128x128xf32>, vector<384x128xf32> -> vector<384x128xf32>
      %c0_20 = arith.constant 0 : index
      %c0_21 = arith.constant 0 : index
      %25 = vector.load %arg7[%c0_20, %c0_21] : memref<384x128xf32, #tpu.memory_space<vmem>>, vector<384x128xf32>
      tpu.vector_store %arg7[%c0_20, %c0_21], %24 {strides = array<i32>} : memref<384x128xf32, #tpu.memory_space<vmem>>, vector<384x128xf32>,
    } else {
    }
    return
  }
  func.func @transform_0(%arg0: i32, %arg1: i32) -> (i32, i32) {
    %c0_i32 = arith.constant 0 : i32
    return %arg0, %arg1 : i32, i32
  }
  func.func @transform_1(%arg0: i32, %arg1: i32) -> (i32, i32) {
    %c0_i32 = arith.constant 0 : i32
    %c0_i32_0 = arith.constant 0 : i32
    %c0_i32_1 = arith.constant 0 : i32
    return %c0_i32, %c0_i32_0 : i32, i32
  }
  func.func @transform_2(%arg0: i32, %arg1: i32) -> (i32, i32) {
    %c0_i32 = arith.constant 0 : i32
    %c0_i32_0 = arith.constant 0 : i32
    %c0_i32_1 = arith.constant 0 : i32
    return %c0_i32, %c0_i32_0 : i32, i32
  }
  func.func @transform_3(%arg0: i32, %arg1: i32) -> (i32, i32) {
    %c0_i32 = arith.constant 0 : i32
    %c0_i32_0 = arith.constant 0 : i32
    %c0_i32_1 = arith.constant 0 : i32
    return %c0_i32, %c0_i32_0 : i32, i32
  }
  func.func @transform_4(%arg0: i32, %arg1: i32) -> (i32, i32) {
    %c0_i32 = arith.constant 0 : i32
    %c0_i32_0 = arith.constant 0 : i32
    %c0_i32_1 = arith.constant 0 : i32
    return %c0_i32, %c0_i32_0 : i32, i32
  }
  func.func @transform_5(%arg0: i32, %arg1: i32) -> (i32, i32) {
    %c0_i32 = arith.constant 0 : i32
    %c0_i32_0 = arith.constant 0 : i32
    return %arg0, %c0_i32 : i32, i32
  }
}

</mosaic_0001>

<bundles_post_ra>
// kernel: tpu_custom_call.1
= control target key start
LH: loop header
LB: loop body
LE: loop exit
PB: predicated region body
PF: predicated region fallthrough
CT: control target
= control target key end

     0   :  { %10 = vsyncpa [#allocation4], 0  ;;  %s3160_s0 = inlined_call_operand.hbm [shape: f32[384,384], index: 0, kind: input, shape index: {}]   ;;  %s3161_s1 = inlined_call_operand.hbm [shape: f32[384,128], index: 1, kind: input, shape index: {}]   ;;  %s3162_s2 = inlined_call_operand.hbm [shape: f32[128,128], index: 2, kind: input, shape index: {}]   ;;  %s3163_s3 = inlined_call_operand.vmem [shape: f32[1,128], index: 3, kind: input, shape index: {}]   ;;  %s3164_s4 = inlined_call_operand.hbm [shape: f32[128,128], index: 4, kind: input, shape index: {}]   ;;  %s3165_s5 = inlined_call_operand.hbm [shape: f32[384,128], index: 5, kind: output, shape index: {}]  }
   0x1   :  { %11 = vsyncpa [#allocation7], 0 }
   0x2   :  { %12 = vsyncpa [#allocation10], 0 }
   0x3   :  { %13 = vsyncpa [#allocation5], 0  ;;  %s2684_s18 = smov [#allocation6]   ;;  %s2566_s22 = scalar_lea.hbm %s3161_s1, 6144 }
   0x4   :  { %s31_s19 = sshll.u32 %s2684_s18, 4  ;;  %p2567_p0 = scmp.ne.s32.totalorder %s3161_s1, %s2566_s22  ;;  %s32_s19 = int_to_ptr.vmem [resolvable:$true] %s31_s19 }
   0x5   :  { %p2570_p1 = scmp.lt.u32.totalorder %s2566_s22, %s3161_s1 }
   0x7   :  { %p2572_p2 = pnand %p2570_p1, %p2567_p0 }
   0x9   :  { %2575 = shalt.err (!%p2572_p2)
}
   0xa   :  { %s2576_s27 = scalar_lea.vmem %s32_s19, 6144  ;;  %p2581_p4 = scmp.lt.s32.totalorder %s32_s19, %s32_s19 }
   0xb   :  { %p2577_p3 = scmp.ne.s32.totalorder %s32_s19, %s2576_s27  ;;  %p2582_p5 = scmp.lt.s32.totalorder %s2576_s27, %s2576_s27 }
   0xd   :  { %p2583_p6 = por %p2582_p5, %p2581_p4 }
   0xf   :  { %p2584_p7 = pnand %p2583_p6, %p2577_p3 }
  0x11   :  { %2587 = shalt.err (!%p2584_p7)
}
  0x12   :  { %s2685_s28 = smov 128   ;;  %s2686_s29 = smov 8  }
  0x13   :  { %37 = dma.hbm_to_vmem [thread:$0]  %s3161_s1, 6144, %s32_s19, [#allocation7], %s2685_s28, %s2685_s28, %s2686_s29  }
  0x14   :  { %s2687_s7 = smov [#allocation3]   ;;  %s2588_s11 = scalar_lea.hbm %s3160_s0, 18432 }
  0x15   :  { %s19_s8 = sshll.u32 %s2687_s7, 4  ;;  %p2589_p8 = scmp.ne.s32.totalorder %s3160_s0, %s2588_s11  ;;  %s20_s8 = int_to_ptr.vmem [resolvable:$true] %s19_s8 }
  0x16   :  { %p2592_p9 = scmp.lt.u32.totalorder %s2588_s11, %s3160_s0 }
  0x18   :  { %p2594_p10 = pnand %p2592_p9, %p2589_p8 }
  0x1a   :  { %2597 = shalt.err (!%p2594_p10)
}
  0x1b   :  { %s2598_s16 = scalar_lea.vmem %s20_s8, 18432  ;;  %p2603_p12 = scmp.lt.s32.totalorder %s20_s8, %s20_s8 }
  0x1c   :  { %p2599_p11 = scmp.ne.s32.totalorder %s20_s8, %s2598_s16  ;;  %p2604_p13 = scmp.lt.s32.totalorder %s2598_s16, %s2598_s16 }
  0x1e   :  { %p2605_p0 = por %p2604_p13, %p2603_p12 }
  0x20   :  { %p2606_p1 = pnand %p2605_p0, %p2599_p11 }
  0x22   :  { %2609 = shalt.err (!%p2606_p1)
}
  0x23   :  { %s2688_s1 = smov 384   ;;  %s2689_s17 = smov 24  }
  0x24   :  { %25 = dma.hbm_to_vmem [thread:$0]  %s3160_s0, 18432, %s20_s8, [#allocation4], %s2688_s1, %s2688_s1, %s2689_s17  }
  0x25   :  { %s2690_s20 = smov [#allocation8]   ;;  %s2691_s22 = smov [#allocation9]  }
  0x26   :  { %s43_s21 = sshll.u32 %s2690_s20, 4  ;;  %s57_s23 = sshll.u32 %s2691_s22, 4  ;;  %s44_s21 = int_to_ptr.vmem [resolvable:$true] %s43_s21  ;;  %s2751_s23 = int_to_ptr.vmem [resolvable:$true] %s57_s23 }
  0x27   :  { %s2610_s26 = scalar_lea.hbm %s3162_s2, 2048 }
  0x28   :  { %p2611_p2 = scmp.ne.s32.totalorder %s3162_s2, %s2610_s26  ;;  %p2614_p3 = scmp.lt.u32.totalorder %s2610_s26, %s3162_s2 }
  0x2a   :  { %p2616_p4 = pnand %p2614_p3, %p2611_p2 }
  0x2c   :  { %2619 = shalt.err (!%p2616_p4)
}
  0x2d   :  { %s2620_s0 = scalar_lea.vmem %s44_s21, 2048  ;;  %p2625_p6 = scmp.lt.s32.totalorder %s44_s21, %s44_s21 }
  0x2e   :  { %p2621_p5 = scmp.ne.s32.totalorder %s44_s21, %s2620_s0  ;;  %p2626_p7 = scmp.lt.s32.totalorder %s2620_s0, %s2620_s0 }
  0x30   :  { %p2627_p8 = por %p2626_p7, %p2625_p6 }
  0x32   :  { %p2628_p9 = pnand %p2627_p8, %p2621_p5 }
  0x34   :  { %2631 = shalt.err (!%p2628_p9)
}
  0x35   :  { %49 = dma.hbm_to_vmem [thread:$0]  %s3162_s2, 2048, %s44_s21, [#allocation7], %s2685_s28, %s2685_s28, %s2686_s29  }
  0x36   :  { %s2632_s12 = scalar_lea.hbm %s3164_s4, 2048 }
  0x37   :  { %p2633_p10 = scmp.ne.s32.totalorder %s3164_s4, %s2632_s12  ;;  %p2636_p11 = scmp.lt.u32.totalorder %s2632_s12, %s3164_s4 }
  0x39   :  { %p2638_p12 = pnand %p2636_p11, %p2633_p10 }
  0x3b   :  { %2641 = shalt.err (!%p2638_p12)
}
  0x3c   :  { %s2642_s1 = scalar_lea.vmem %s2751_s23, 2048  ;;  %p2647_p0 = scmp.lt.s32.totalorder %s2751_s23, %s2751_s23 }
  0x3d   :  { %p2643_p13 = scmp.ne.s32.totalorder %s2751_s23, %s2642_s1  ;;  %p2648_p1 = scmp.lt.s32.totalorder %s2642_s1, %s2642_s1 }
  0x3f   :  { %p2649_p2 = por %p2648_p1, %p2647_p0 }
  0x41   :  { %p2650_p3 = pnand %p2649_p2, %p2643_p13 }
  0x43   :  { %2653 = shalt.err (!%p2650_p3)
}
  0x44   :  { %63 = dma.hbm_to_vmem [thread:$0]  %s3164_s4, 2048, %s2751_s23, [#allocation10], %s2685_s28, %s2685_s28, %s2686_s29  }
  0x45   :  { %2676 = dma.done.wait [#allocation4], 18432  }
  0x46   :  { %2677 = vsyncadd [#allocation4], 4294948864 }
  0x47   :  { %2678 = dma.done.wait [#allocation7], 8192  }
  0x48   :  { %2679 = vsyncadd [#allocation7], 4294959104 }
  0x49   :  { %2680 = dma.done.wait [#allocation10], 2048  }
  0x4a   :  { %2681 = vsyncadd [#allocation10], 4294965248  ;;  %v2692_v0 = vmov 0.0|0.0   ;;  %v130_v1 = vld [vmem:[#allocation6] sm:$0xff]  ;;  %v131_v2 = vld [vmem:[#allocation6 + $0x8] sm:$0xff] }
  0x4b   :  { %2396 = vmatprep.subr.bf16.mxu0 %v2692_v0  ;;  %v132_v3 = vld [vmem:[#allocation6 + $0x10] sm:$0xff]  ;;  %v2397_v4 = vpack.c.bf16 %v131_v2, %v130_v1  ;;  %v133_v5 = vld [vmem:[#allocation6 + $0x18] sm:$0xff]  ;;  %v134_v7 = vld [vmem:[#allocation6 + $0x20] sm:$0xff] }
  0x4c   :  { %v2400_v6 = vpack.c.bf16 %v133_v5, %v132_v3  ;;  %v135_v8 = vld [vmem:[#allocation6 + $0x28] sm:$0xff]  ;;  %v136_v10 = vld [vmem:[#allocation6 + $0x30] sm:$0xff]  ;;  %v137_v11 = vld [vmem:[#allocation6 + $0x38] sm:$0xff] }
  0x4d   :  { %2398 = vmatpush1.bf16.msra.mxu0 %v2397_v4  ;;  %v2403_v9 = vpack.c.bf16 %v135_v8, %v134_v7  ;;  %v227_v12 = vld [vmem:[#allocation3 + $0x8] sm:$0xff]  ;;  %v2406_v13 = vpack.c.bf16 %v137_v11, %v136_v10  ;;  %v162_v14 = vld [vmem:[#allocation6 + $0x100] sm:$0xff]  ;;  %v140_v20 = vld [vmem:[#allocation6 + $0x50] sm:$0xff] }
  0x4e   :  { %2399 = vmatprep.subr.bf16.mxu0 %v2692_v0  ;;  %434 = vmatprep.mubr.f32.mxu0 %v227_v12  ;;  %v163_v15 = vld [vmem:[#allocation6 + $0x108] sm:$0xff]  ;;  %v138_v16 = vld [vmem:[#allocation6 + $0x40] sm:$0xff]  ;;  %v141_v21 = vld [vmem:[#allocation6 + $0x58] sm:$0xff] }
  0x4f   :  { %v139_v17 = vld [vmem:[#allocation6 + $0x48] sm:$0xff]  ;;  %v2792_v18 = vpack.c.bf16 %v163_v15, %v162_v14  ;;  %v164_v22 = vld [vmem:[#allocation6 + $0x110] sm:$0xff]  ;;  %v165_v23 = vld [vmem:[#allocation6 + $0x118] sm:$0xff]  ;;  %v2412_v25 = vpack.c.bf16 %v141_v21, %v140_v20 }
  0x50   :  { %v2409_v19 = vpack.c.bf16 %v139_v17, %v138_v16  ;;  %v2797_v24 = vpack.c.bf16 %v165_v23, %v164_v22  ;;  %v166_v26 = vld [vmem:[#allocation6 + $0x120] sm:$0xff]  ;;  %v167_v27 = vld [vmem:[#allocation6 + $0x128] sm:$0xff]  ;;  %v168_v31 = vld [vmem:[#allocation6 + $0x130] sm:$0xff] }
  0x51   :  { %2401 = vmatpush1.bf16.msra.mxu0 %v2400_v6  ;;  %2540 = vmatprep.subr.bf16.mxu1 %v2792_v18  ;;  %v142_v28 = vld [vmem:[#allocation6 + $0x60] sm:$0xff]  ;;  %v143_v29 = vld [vmem:[#allocation6 + $0x68] sm:$0xff]  ;;  %v2802_v30 = vpack.c.bf16 %v167_v27, %v166_v26  ;;  %v169_v32 = vld [vmem:[#allocation6 + $0x138] sm:$0xff] }
  0x52   :  { %2402 = vmatprep.subr.bf16.mxu0 %v2692_v0  ;;  %2548 = vmatpush3.bf16.msra.mxu1 %v2792_v18  ;;  %v2805_v33 = vpack.c.bf16 %v169_v32, %v168_v31  ;;  %v170_v34 = vld [vmem:[#allocation6 + $0x140] sm:$0xff]  ;;  %v171_v35 = vld [vmem:[#allocation6 + $0x148] sm:$0xff]  ;;  %v2415_v36 = vpack.c.bf16 %v143_v29, %v142_v28  ;;  %v144_v37 = vld [vmem:[#allocation6 + $0x70] sm:$0xff] }
  0x53   :  { %2541 = vmatprep.subr.bf16.mxu1 %v2797_v24  ;;  %v145_v38 = vld [vmem:[#allocation6 + $0x78] sm:$0xff]  ;;  %v2810_v39 = vpack.c.bf16 %v171_v35, %v170_v34  ;;  %v172_v40 = vld [vmem:[#allocation6 + $0x150] sm:$0xff]  ;;  %v146_v44 = vld [vmem:[#allocation6 + $0x80] sm:$0xff] }
  0x54   :  { %v173_v41 = vld [vmem:[#allocation6 + $0x158] sm:$0xff]  ;;  %v2418_v42 = vpack.c.bf16 %v145_v38, %v144_v37  ;;  %v276_v43 = vld [vmem:[#allocation3 + $0x190] sm:$0xff]  ;;  %v147_v45 = vld [vmem:[#allocation6 + $0x88] sm:$0xff] }
  0x55   :  { %2404 = vmatpush1.bf16.msra.mxu0 %v2403_v9  ;;  %v2815_v46 = vpack.c.bf16 %v173_v41, %v172_v40  ;;  %2140 = vmatprep.mubr.f32.mxu1 %v276_v43  ;;  %v174_v47 = vld [vmem:[#allocation6 + $0x160] sm:$0xff]  ;;  %v175_v48 = vld [vmem:[#allocation6 + $0x168] sm:$0xff]  ;;  %v2421_v49 = vpack.c.bf16 %v147_v45, %v146_v44  ;;  %v148_v50 = vld [vmem:[#allocation6 + $0x90] sm:$0xff] }
  0x56   :  { %2405 = vmatprep.subr.bf16.mxu0 %v2692_v0  ;;  %2549 = vmatpush3.bf16.msra.mxu1 %v2797_v24  ;;  %v149_v51 = vld [vmem:[#allocation6 + $0x98] sm:$0xff]  ;;  %v2820_v52 = vpack.c.bf16 %v175_v48, %v174_v47  ;;  %v176_v53 = vld [vmem:[#allocation6 + $0x170] sm:$0xff]  ;;  %v150_v56 = vld [vmem:[#allocation6 + $0xa0] sm:$0xff] }
  0x57   :  { %2542 = vmatprep.subr.bf16.mxu1 %v2802_v30  ;;  %v177_v54 = vld [vmem:[#allocation6 + $0x178] sm:$0xff]  ;;  %v2424_v55 = vpack.c.bf16 %v149_v51, %v148_v50  ;;  %v151_v57 = vld [vmem:[#allocation6 + $0xa8] sm:$0xff]  ;;  %v152_v60 = vld [vmem:[#allocation6 + $0xb0] sm:$0xff] }
  0x58   :  { %v2825_v58 = vpack.c.bf16 %v177_v54, %v176_v53  ;;  %v2427_v59 = vpack.c.bf16 %v151_v57, %v150_v56  ;;  %v153_v61 = vld [vmem:[#allocation6 + $0xb8] sm:$0xff]  ;;  %v154_v63 = vld [vmem:[#allocation6 + $0xc0] sm:$0xff]  ;;  %v155_v1 = vld [vmem:[#allocation6 + $0xc8] sm:$0xff] }
  0x59   :  { %2407 = vmatpush1.bf16.msra.mxu0 %v2406_v13  ;;  %v2430_v62 = vpack.c.bf16 %v153_v61, %v152_v60  ;;  %v279_v2 = vld [vmem:[#allocation3 + $0x1a8] sm:$0xff]  ;;  %v282_v3 = vld [vmem:[#allocation3 + $0x1c0] sm:$0xff]  ;;  %v2433_v4 = vpack.c.bf16 %v155_v1, %v154_v63  ;;  %v156_v5 = vld [vmem:[#allocation6 + $0xd0] sm:$0xff] }
  0x5a   :  { %2408 = vmatprep.subr.bf16.mxu0 %v2692_v0  ;;  %2550 = vmatpush3.bf16.msra.mxu1 %v2802_v30  ;;  %v157_v6 = vld [vmem:[#allocation6 + $0xd8] sm:$0xff]  ;;  %v288_v8 = vld [vmem:[#allocation3 + $0x1f0] sm:$0xff]  ;;  %v158_v10 = vld [vmem:[#allocation6 + $0xe0] sm:$0xff] }
  0x5b   :  { %2543 = vmatprep.subr.bf16.mxu1 %v2805_v33  ;;  %v285_v7 = vld [vmem:[#allocation3 + $0x1d8] sm:$0xff]  ;;  %v2436_v9 = vpack.c.bf16 %v157_v6, %v156_v5  ;;  %v159_v11 = vld [vmem:[#allocation6 + $0xe8] sm:$0xff]  ;;  %v294_v13 = vld [vmem:[#allocation3 + $0x220] sm:$0xff] }
  0x5c   :  { %v291_v12 = vld [vmem:[#allocation3 + $0x208] sm:$0xff]  ;;  %v2439_v14 = vpack.c.bf16 %v159_v11, %v158_v10  ;;  %v160_v15 = vld [vmem:[#allocation6 + $0xf0] sm:$0xff]  ;;  %v161_v16 = vld [vmem:[#allocation6 + $0xf8] sm:$0xff] }
  0x5d   :  { %2410 = vmatpush1.bf16.msra.mxu0 %v2409_v19  ;;  %v297_v17 = vld [vmem:[#allocation3 + $0x238] sm:$0xff]  ;;  %v300_v19 = vld [vmem:[#allocation3 + $0x250] sm:$0xff]  ;;  %v2442_v20 = vpack.c.bf16 %v161_v16, %v160_v15  ;;  %v303_v21 = vld [vmem:[#allocation3 + $0x268] sm:$0xff] }
  0x5e   :  { %2411 = vmatprep.subr.bf16.mxu0 %v2692_v0  ;;  %2551 = vmatpush3.bf16.msra.mxu1 %v2805_v33  ;;  %v306_v22 = vld [vmem:[#allocation3 + $0x280] sm:$0xff]  ;;  %v309_v26 = vld [vmem:[#allocation3 + $0x298] sm:$0xff]  ;;  %v312_v27 = vld [vmem:[#allocation3 + $0x2b0] sm:$0xff] }
  0x5f   :  { %2544 = vmatprep.subr.bf16.mxu1 %v2810_v39  ;;  %v226_v23 = vld [vmem:[#allocation3] sm:$0xff]  ;;  %v229_v28 = vld [vmem:[#allocation3 + $0x18] sm:$0xff]  ;;  %v232_v32 = vld [vmem:[#allocation3 + $0x30] sm:$0xff] }
  0x60   :  { %v233_v29 = vld [vmem:[#allocation3 + $0x38] sm:$0xff]  ;;  %v318_v31 = vld [vmem:[#allocation3 + $0x2e0] sm:$0xff]  ;;  %v236_v34 = vld [vmem:[#allocation3 + $0x50] sm:$0xff] }
  0x61   :  { %2413 = vmatpush1.bf16.msra.mxu0 %v2412_v25  ;;  %v230_v25 = vld [vmem:[#allocation3 + $0x20] sm:$0xff]  ;;  %v324_v35 = vld [vmem:[#allocation3 + $0x310] sm:$0xff]  ;;  %v239_v37 = vld [vmem:[#allocation3 + $0x68] sm:$0xff] }
  0x62   :  { %2414 = vmatprep.subr.bf16.mxu0 %v2692_v0  ;;  %2552 = vmatpush3.bf16.msra.mxu1 %v2810_v39  ;;  %v327_v38 = vld [vmem:[#allocation3 + $0x328] sm:$0xff]  ;;  %v238_v40 = vld [vmem:[#allocation3 + $0x60] sm:$0xff]  ;;  %v241_v43 = vld [vmem:[#allocation3 + $0x78] sm:$0xff] }
  0x63   :  { %2545 = vmatprep.subr.bf16.mxu1 %v2815_v46  ;;  %v242_v41 = vld [vmem:[#allocation3 + $0x80] sm:$0xff]  ;;  %v245_v44 = vld [vmem:[#allocation3 + $0x98] sm:$0xff]  ;;  %v339_v45 = vld [vmem:[#allocation3 + $0x388] sm:$0xff] }
  0x64   :  { %v342_v47 = vld [vmem:[#allocation3 + $0x3a0] sm:$0xff]  ;;  %v248_v48 = vld [vmem:[#allocation3 + $0xb0] sm:$0xff]  ;;  %v251_v50 = vld [vmem:[#allocation3 + $0xc8] sm:$0xff] }
  0x65   :  { %2416 = vmatpush1.bf16.msra.mxu0 %v2415_v36  ;;  %v235_v36 = vld [vmem:[#allocation3 + $0x48] sm:$0xff]  ;;  %v250_v51 = vld [vmem:[#allocation3 + $0xc0] sm:$0xff]  ;;  %v257_v56 = vld [vmem:[#allocation3 + $0xf8] sm:$0xff] }
  0x66   :  { %2417 = vmatprep.subr.bf16.mxu0 %v2692_v0  ;;  %2553 = vmatpush3.bf16.msra.mxu1 %v2815_v46  ;;  %v254_v53 = vld [vmem:[#allocation3 + $0xe0] sm:$0xff]  ;;  %v351_v54 = vld [vmem:[#allocation3 + $0x3e8] sm:$0xff]  ;;  %v357_v60 = vld [vmem:[#allocation3 + $0x418] sm:$0xff] }
  0x67   :  { %2546 = vmatprep.subr.bf16.mxu1 %v2820_v52  ;;  %v354_v57 = vld [vmem:[#allocation3 + $0x400] sm:$0xff]  ;;  %v259_v61 = vld [vmem:[#allocation3 + $0x108] sm:$0xff]  ;;  %v360_v63 = vld [vmem:[#allocation3 + $0x430] sm:$0xff] }
  0x68   :  { %v266_v1 = vld [vmem:[#allocation3 + $0x140] sm:$0xff]  ;;  %v268_v5 = vld [vmem:[#allocation3 + $0x150] sm:$0xff]  ;;  %v275_v10 = vld [vmem:[#allocation3 + $0x188] sm:$0xff] }
  0x69   :  { %2419 = vmatpush1.bf16.msra.mxu0 %v2418_v42  ;;  %v333_v42 = vld [vmem:[#allocation3 + $0x358] sm:$0xff]  ;;  %v366_v6 = vld [vmem:[#allocation3 + $0x460] sm:$0xff]  ;;  %v280_v15 = vld [vmem:[#allocation3 + $0x1b0] sm:$0xff] }
  0x6a   :  { %2420 = vmatprep.subr.bf16.mxu0 %v2692_v0  ;;  %2554 = vmatpush3.bf16.msra.mxu1 %v2820_v52  ;;  %v274_v11 = vld [vmem:[#allocation3 + $0x180] sm:$0xff]  ;;  %v284_v16 = vld [vmem:[#allocation3 + $0x1d0] sm:$0xff] }
  0x6b   :  { %2547 = vmatprep.subr.bf16.mxu1 %v2825_v58 }
  0x6d   :  { %2422 = vmatpush1.bf16.msra.mxu0 %v2421_v49  ;;  %v345_v49 = vld [vmem:[#allocation3 + $0x3b8] sm:$0xff] }
  0x6e   :  { %2423 = vmatprep.subr.bf16.mxu0 %v2692_v0  ;;  %2555 = vmatpush3.bf16.msra.mxu1 %v2825_v58 }
  0x71   :  { %2425 = vmatpush1.bf16.msra.mxu0 %v2424_v55  ;;  %2141 = vmatmul.mubr.f32.vlgmr.msra.gmra.mrb[0].mxu1 %v279_v2  ;;  %v253_v55 = vld [vmem:[#allocation3 + $0xd8] sm:$0xff]  ;;  %v363_v2 = vld [vmem:[#allocation3 + $0x448] sm:$0xff] }
  0x72   :  { %2426 = vmatprep.subr.bf16.mxu0 %v2692_v0  ;;  %2143 = vmatprep.mubr.f32.mxu1 %v282_v3  ;;  %v265_v3 = vld [vmem:[#allocation3 + $0x138] sm:$0xff] }
  0x75   :  { %2428 = vmatpush1.bf16.msra.mxu0 %v2427_v59  ;;  %2144 = vmatmul.mubr.f32.gmra.mrb[2].mxu1 %v285_v7  ;;  %v260_v59 = vld [vmem:[#allocation3 + $0x110] sm:$0xff] }
  0x76   :  { %2429 = vmatprep.subr.bf16.mxu0 %v2692_v0  ;;  %2146 = vmatprep.mubr.f32.mxu1 %v288_v8  ;;  %v272_v7 = vld [vmem:[#allocation3 + $0x170] sm:$0xff]  ;;  %v369_v8 = vld [vmem:[#allocation3 + $0x478] sm:$0xff] }
  0x79   :  { %2431 = vmatpush1.bf16.msra.mxu0 %v2430_v62  ;;  %2147 = vmatmul.mubr.f32.gmra.mrb[4].mxu1 %v291_v12  ;;  %v262_v62 = vld [vmem:[#allocation3 + $0x120] sm:$0xff] }
  0x7a   :  { %2432 = vmatprep.subr.bf16.mxu0 %v2692_v0  ;;  %2149 = vmatprep.mubr.f32.mxu1 %v294_v13  ;;  %v278_v12 = vld [vmem:[#allocation3 + $0x1a0] sm:$0xff]  ;;  %v277_v13 = vld [vmem:[#allocation3 + $0x198] sm:$0xff] }
  0x7d   :  { %2434 = vmatpush1.bf16.msra.mxu0 %v2433_v4  ;;  %2150 = vmatmul.mubr.f32.gmra.mrb[6].mxu1 %v297_v17  ;;  %v269_v4 = vld [vmem:[#allocation3 + $0x158] sm:$0xff]  ;;  %v283_v17 = vld [vmem:[#allocation3 + $0x1c8] sm:$0xff] }
  0x7e   :  { %2435 = vmatprep.subr.bf16.mxu0 %v2692_v0  ;;  %2152 = vmatprep.mubr.f32.mxu1 %v300_v19  ;;  %v287_v19 = vld [vmem:[#allocation3 + $0x1e8] sm:$0xff] }
  0x81   :  { %2437 = vmatpush1.bf16.msra.mxu0 %v2436_v9  ;;  %2153 = vmatmul.mubr.f32.gmra.mrb[8].mxu1 %v303_v21  ;;  %v271_v9 = vld [vmem:[#allocation3 + $0x168] sm:$0xff]  ;;  %v290_v21 = vld [vmem:[#allocation3 + $0x200] sm:$0xff] }
  0x82   :  { %2438 = vmatprep.subr.bf16.mxu0 %v2692_v0  ;;  %2155 = vmatprep.mubr.f32.mxu1 %v306_v22  ;;  %v289_v22 = vld [vmem:[#allocation3 + $0x1f8] sm:$0xff] }
  0x85   :  { %2440 = vmatpush1.bf16.msra.mxu0 %v2439_v14  ;;  %2156 = vmatmul.mubr.f32.gmra.mrb[10].mxu1 %v309_v26  ;;  %v281_v14 = vld [vmem:[#allocation3 + $0x1b8] sm:$0xff]  ;;  %v296_v26 = vld [vmem:[#allocation3 + $0x230] sm:$0xff] }
  0x86   :  { %2441 = vmatprep.subr.bf16.mxu0 %v2692_v0  ;;  %2158 = vmatprep.mubr.f32.mxu1 %v312_v27  ;;  %v315_v0 = vld [vmem:[#allocation3 + $0x2c8] sm:$0xff] }
  0x87   :  { %v295_v27 = vld [vmem:[#allocation3 + $0x228] sm:$0xff] }
  0x89   :  { %2443 = vmatpush1.bf16.msra.mxu0 %v2442_v20  ;;  %2159 = vmatmul.mubr.f32.gmra.mrb[12].mxu1 %v315_v0  ;;  %v286_v20 = vld [vmem:[#allocation3 + $0x1e0] sm:$0xff] }
  0x8a   :  { %2445 = vmatprep.subr.bf16.mxu0 %v2792_v18  ;;  %2161 = vmatprep.mubr.f32.mxu1 %v318_v31  ;;  %v302_v0 = vld [vmem:[#allocation3 + $0x260] sm:$0xff]  ;;  %v301_v31 = vld [vmem:[#allocation3 + $0x258] sm:$0xff] }
  0x8c   :  { %435 = vmatmul.mubr.f32.vlgmr.msra.gmra.mrb[0].mxu0 %v226_v23  ;;  %v293_v23 = vld [vmem:[#allocation3 + $0x218] sm:$0xff] }
  0x8d   :  { %2447 = vmatpush3.bf16.msra.mxu0 %v2792_v18  ;;  %439 = vmatprep.mubr.f32.mxu0 %v230_v25  ;;  %v321_v18 = vld [vmem:[#allocation3 + $0x2f8] sm:$0xff]  ;;  %v292_v25 = vld [vmem:[#allocation3 + $0x210] sm:$0xff] }
  0x8e   :  { %2449 = vmatprep.subr.bf16.mxu0 %v2797_v24  ;;  %2162 = vmatmul.mubr.f32.gmra.mrb[14].mxu1 %v321_v18  ;;  %v308_v18 = vld [vmem:[#allocation3 + $0x290] sm:$0xff] }
  0x8f   :  { %2164 = vmatprep.mubr.f32.mxu1 %v324_v35  ;;  %v307_v35 = vld [vmem:[#allocation3 + $0x288] sm:$0xff] }
  0x90   :  { %440 = vmatmul.mubr.f32.gmra.mrb[2].mxu0 %v229_v28  ;;  %v299_v28 = vld [vmem:[#allocation3 + $0x248] sm:$0xff] }
  0x91   :  { %444 = vmatprep.mubr.f32.mxu0 %v233_v29  ;;  %2451 = vmatpush3.bf16.msra.mxu0 %v2797_v24  ;;  %v330_v24 = vld [vmem:[#allocation3 + $0x340] sm:$0xff] }
  0x92   :  { %2453 = vmatprep.subr.bf16.mxu0 %v2802_v30  ;;  %2165 = vmatmul.mubr.f32.gmra.mrb[16].mxu1 %v327_v38  ;;  %v298_v29 = vld [vmem:[#allocation3 + $0x240] sm:$0xff] }
  0x93   :  { %2167 = vmatprep.mubr.f32.mxu1 %v330_v24  ;;  %v314_v38 = vld [vmem:[#allocation3 + $0x2c0] sm:$0xff]  ;;  %v313_v24 = vld [vmem:[#allocation3 + $0x2b8] sm:$0xff] }
  0x94   :  { %445 = vmatmul.mubr.f32.gmra.mrb[4].mxu0 %v232_v32  ;;  %v305_v32 = vld [vmem:[#allocation3 + $0x278] sm:$0xff] }
  0x95   :  { %449 = vmatprep.mubr.f32.mxu0 %v236_v34  ;;  %2455 = vmatpush3.bf16.msra.mxu0 %v2802_v30  ;;  %v336_v30 = vld [vmem:[#allocation3 + $0x370] sm:$0xff] }
  0x96   :  { %2457 = vmatprep.subr.bf16.mxu0 %v2805_v33  ;;  %2168 = vmatmul.mubr.f32.gmra.mrb[18].mxu1 %v333_v42  ;;  %v304_v34 = vld [vmem:[#allocation3 + $0x270] sm:$0xff] }
  0x97   :  { %2170 = vmatprep.mubr.f32.mxu1 %v336_v30  ;;  %v320_v42 = vld [vmem:[#allocation3 + $0x2f0] sm:$0xff]  ;;  %v319_v30 = vld [vmem:[#allocation3 + $0x2e8] sm:$0xff] }
  0x98   :  { %450 = vmatmul.mubr.f32.gmra.mrb[6].mxu0 %v235_v36  ;;  %v311_v36 = vld [vmem:[#allocation3 + $0x2a8] sm:$0xff] }
  0x99   :  { %454 = vmatprep.mubr.f32.mxu0 %v239_v37  ;;  %2459 = vmatpush3.bf16.msra.mxu0 %v2805_v33  ;;  %v244_v33 = vld [vmem:[#allocation3 + $0x90] sm:$0xff]  ;;  %v310_v37 = vld [vmem:[#allocation3 + $0x2a0] sm:$0xff] }
  0x9a   :  { %2461 = vmatprep.subr.bf16.mxu0 %v2810_v39  ;;  %2171 = vmatmul.mubr.f32.gmra.mrb[20].mxu1 %v339_v45  ;;  %v326_v45 = vld [vmem:[#allocation3 + $0x320] sm:$0xff] }
  0x9b   :  { %2173 = vmatprep.mubr.f32.mxu1 %v342_v47  ;;  %v329_v47 = vld [vmem:[#allocation3 + $0x338] sm:$0xff] }
  0x9c   :  { %455 = vmatmul.mubr.f32.gmra.mrb[8].mxu0 %v238_v40  ;;  %v317_v40 = vld [vmem:[#allocation3 + $0x2d8] sm:$0xff] }
  0x9d   :  { %459 = vmatprep.mubr.f32.mxu0 %v242_v41  ;;  %2463 = vmatpush3.bf16.msra.mxu0 %v2810_v39  ;;  %v247_v39 = vld [vmem:[#allocation3 + $0xa8] sm:$0xff]  ;;  %v316_v41 = vld [vmem:[#allocation3 + $0x2d0] sm:$0xff] }
  0x9e   :  { %2465 = vmatprep.subr.bf16.mxu0 %v2815_v46  ;;  %2174 = vmatmul.mubr.f32.gmra.mrb[22].mxu1 %v345_v49  ;;  %v332_v49 = vld [vmem:[#allocation3 + $0x350] sm:$0xff] }
  0xa0   :  { %460 = vmatmul.mubr.f32.gmra.mrb[10].mxu0 %v241_v43  ;;  %v323_v43 = vld [vmem:[#allocation3 + $0x308] sm:$0xff] }
  0xa1   :  { %464 = vmatprep.mubr.f32.mxu0 %v245_v44  ;;  %2467 = vmatpush3.bf16.msra.mxu0 %v2815_v46  ;;  %v348_v46 = vld [vmem:[#allocation3 + $0x3d0] sm:$0xff]  ;;  %v322_v44 = vld [vmem:[#allocation3 + $0x300] sm:$0xff] }
  0xa2   :  { %2469 = vmatprep.subr.bf16.mxu0 %v2820_v52  ;;  %2176 = vmatprep.mubr.f32.mxu1 %v348_v46  ;;  %v338_v46 = vld [vmem:[#allocation3 + $0x380] sm:$0xff] }
  0xa3   :  { %2177 = vmatmul.mubr.f32.gmra.mrb[24].mxu1 %v351_v54  ;;  %v341_v54 = vld [vmem:[#allocation3 + $0x398] sm:$0xff] }
  0xa4   :  { %465 = vmatmul.mubr.f32.gmra.mrb[12].mxu0 %v244_v33  ;;  %2179 = vmatprep.mubr.f32.mxu1 %v354_v57  ;;  %v325_v33 = vld [vmem:[#allocation3 + $0x318] sm:$0xff]  ;;  %v347_v57 = vld [vmem:[#allocation3 + $0x3c8] sm:$0xff] }
  0xa5   :  { %469 = vmatprep.mubr.f32.mxu0 %v248_v48  ;;  %2471 = vmatpush3.bf16.msra.mxu0 %v2820_v52  ;;  %v256_v52 = vld [vmem:[#allocation3 + $0xf0] sm:$0xff] }
  0xa6   :  { %2473 = vmatprep.subr.bf16.mxu0 %v2825_v58  ;;  %v328_v48 = vld [vmem:[#allocation3 + $0x330] sm:$0xff] }
  0xa7   :  { %2180 = vmatmul.mubr.f32.gmra.mrb[26].mxu1 %v357_v60  ;;  %v350_v60 = vld [vmem:[#allocation3 + $0x3e0] sm:$0xff] }
  0xa8   :  { %470 = vmatmul.mubr.f32.gmra.mrb[14].mxu0 %v247_v39  ;;  %2182 = vmatprep.mubr.f32.mxu1 %v360_v63  ;;  %v331_v39 = vld [vmem:[#allocation3 + $0x348] sm:$0xff]  ;;  %v356_v63 = vld [vmem:[#allocation3 + $0x410] sm:$0xff] }
  0xa9   :  { %474 = vmatprep.mubr.f32.mxu0 %v251_v50  ;;  %2475 = vmatpush3.bf16.msra.mxu0 %v2825_v58  ;;  %v263_v58 = vld [vmem:[#allocation3 + $0x128] sm:$0xff] }
  0xaa   :  { %v335_v50 = vld [vmem:[#allocation3 + $0x368] sm:$0xff] }
  0xab   :  { %2183 = vmatmul.mubr.f32.gmra.mrb[28].mxu1 %v363_v2  ;;  %v359_v2 = vld [vmem:[#allocation3 + $0x428] sm:$0xff] }
  0xac   :  { %475 = vmatmul.mubr.f32.gmra.mrb[16].mxu0 %v250_v51  ;;  %2185 = vmatprep.mubr.f32.mxu1 %v366_v6  ;;  %v334_v51 = vld [vmem:[#allocation3 + $0x360] sm:$0xff]  ;;  %v365_v6 = vld [vmem:[#allocation3 + $0x458] sm:$0xff] }
  0xad   :  { %479 = vmatprep.mubr.f32.mxu0 %v254_v53  ;;  %v337_v53 = vld [vmem:[#allocation3 + $0x378] sm:$0xff] }
  0xaf   :  { %2186 = vmatmul.mubr.f32.gmra.mrb[30].mxu1 %v369_v8  ;;  %v368_v8 = vld [vmem:[#allocation3 + $0x470] sm:$0xff] }
  0xb0   :  { %480 = vmatmul.mubr.f32.gmra.mrb[18].mxu0 %v253_v55  ;;  %v340_v55 = vld [vmem:[#allocation3 + $0x390] sm:$0xff] }
  0xb1   :  { %484 = vmatprep.mubr.f32.mxu0 %v257_v56  ;;  %v344_v56 = vld [vmem:[#allocation3 + $0x3b0] sm:$0xff] }
  0xb4   :  { %485 = vmatmul.mubr.f32.gmra.mrb[20].mxu0 %v256_v52  ;;  %v343_v52 = vld [vmem:[#allocation3 + $0x3a8] sm:$0xff] }
  0xb5   :  { %489 = vmatprep.mubr.f32.mxu0 %v260_v59  ;;  %v346_v59 = vld [vmem:[#allocation3 + $0x3c0] sm:$0xff] }
  0xb8   :  { %490 = vmatmul.mubr.f32.gmra.mrb[22].mxu0 %v259_v61  ;;  %v349_v61 = vld [vmem:[#allocation3 + $0x3d8] sm:$0xff] }
  0xb9   :  { %494 = vmatprep.mubr.f32.mxu0 %v263_v58  ;;  %v353_v58 = vld [vmem:[#allocation3 + $0x3f8] sm:$0xff] }
  0xbc   :  { %495 = vmatmul.mubr.f32.gmra.mrb[24].mxu0 %v262_v62  ;;  %v352_v62 = vld [vmem:[#allocation3 + $0x3f0] sm:$0xff] }
  0xbd   :  { %499 = vmatprep.mubr.f32.mxu0 %v266_v1  ;;  %v355_v1 = vld [vmem:[#allocation3 + $0x408] sm:$0xff] }
  0xc0   :  { %500 = vmatmul.mubr.f32.gmra.mrb[26].mxu0 %v265_v3  ;;  %v358_v3 = vld [vmem:[#allocation3 + $0x420] sm:$0xff] }
  0xc1   :  { %504 = vmatprep.mubr.f32.mxu0 %v269_v4  ;;  %v362_v4 = vld [vmem:[#allocation3 + $0x440] sm:$0xff] }
  0xc4   :  { %505 = vmatmul.mubr.f32.gmra.mrb[28].mxu0 %v268_v5  ;;  %v361_v5 = vld [vmem:[#allocation3 + $0x438] sm:$0xff] }
  0xc5   :  { %509 = vmatprep.mubr.f32.mxu0 %v272_v7  ;;  %v364_v7 = vld [vmem:[#allocation3 + $0x450] sm:$0xff] }
  0xc8   :  { %510 = vmatmul.mubr.f32.gmra.mrb[30].mxu0 %v271_v9  ;;  %v367_v9 = vld [vmem:[#allocation3 + $0x468] sm:$0xff] }
  0xc9   :  { %514 = vmatprep.mubr.f32.mxu0 %v275_v10  ;;  %v228_v10 = vld [vmem:[#allocation3 + $0x10] sm:$0xff] }
  0xcc   :  { %515 = vmatmul.mubr.f32.gmra.mrb[32].mxu0 %v274_v11  ;;  %v231_v11 = vld [vmem:[#allocation3 + $0x28] sm:$0xff] }
  0xcd   :  { %519 = vmatprep.mubr.f32.mxu0 %v278_v12  ;;  %v234_v12 = vld [vmem:[#allocation3 + $0x40] sm:$0xff] }
  0xd0   :  { %520 = vmatmul.mubr.f32.gmra.mrb[34].mxu0 %v277_v13 }
  0xd1   :  { %524 = vmatprep.mubr.f32.mxu0 %v281_v14  ;;  %v237_v14 = vld [vmem:[#allocation3 + $0x58] sm:$0xff] }
  0xd4   :  { %525 = vmatmul.mubr.f32.gmra.mrb[36].mxu0 %v280_v15 }
  0xd5   :  { %529 = vmatprep.mubr.f32.mxu0 %v284_v16  ;;  %v240_v16 = vld [vmem:[#allocation3 + $0x70] sm:$0xff] }
  0xd8   :  { %530 = vmatmul.mubr.f32.gmra.mrb[38].mxu0 %v283_v17 }
  0xd9   :  { %534 = vmatprep.mubr.f32.mxu0 %v287_v19  ;;  %v243_v19 = vld [vmem:[#allocation3 + $0x88] sm:$0xff] }
  0xdc   :  { %535 = vmatmul.mubr.f32.gmra.mrb[40].mxu0 %v286_v20 }
  0xdd   :  { %539 = vmatprep.mubr.f32.mxu0 %v290_v21  ;;  %v246_v21 = vld [vmem:[#allocation3 + $0xa0] sm:$0xff] }
  0xe0   :  { %540 = vmatmul.mubr.f32.gmra.mrb[42].mxu0 %v289_v22 }
  0xe1   :  { %544 = vmatprep.mubr.f32.mxu0 %v293_v23  ;;  %v249_v23 = vld [vmem:[#allocation3 + $0xb8] sm:$0xff] }
  0xe4   :  { %545 = vmatmul.mubr.f32.gmra.mrb[44].mxu0 %v292_v25 }
  0xe5   :  { %549 = vmatprep.mubr.f32.mxu0 %v296_v26  ;;  %v252_v26 = vld [vmem:[#allocation3 + $0xd0] sm:$0xff] }
  0xe8   :  { %550 = vmatmul.mubr.f32.gmra.mrb[46].mxu0 %v295_v27 }
  0xe9   :  { %554 = vmatprep.mubr.f32.mxu0 %v299_v28  ;;  %v255_v28 = vld [vmem:[#allocation3 + $0xe8] sm:$0xff] }
  0xec   :  { %555 = vmatmul.mubr.f32.gmra.mrb[48].mxu0 %v298_v29 }
  0xed   :  { %559 = vmatprep.mubr.f32.mxu0 %v302_v0  ;;  %v258_v0 = vld [vmem:[#allocation3 + $0x100] sm:$0xff] }
  0xf0   :  { %560 = vmatmul.mubr.f32.gmra.mrb[50].mxu0 %v301_v31 }
  0xf1   :  { %564 = vmatprep.mubr.f32.mxu0 %v305_v32  ;;  %v261_v32 = vld [vmem:[#allocation3 + $0x118] sm:$0xff] }
  0xf4   :  { %565 = vmatmul.mubr.f32.gmra.mrb[52].mxu0 %v304_v34 }
  0xf5   :  { %569 = vmatprep.mubr.f32.mxu0 %v308_v18  ;;  %v264_v18 = vld [vmem:[#allocation3 + $0x130] sm:$0xff] }
  0xf8   :  { %570 = vmatmul.mubr.f32.gmra.mrb[54].mxu0 %v307_v35 }
  0xf9   :  { %574 = vmatprep.mubr.f32.mxu0 %v311_v36 }
  0xfc   :  { %575 = vmatmul.mubr.f32.gmra.mrb[56].mxu0 %v310_v37  ;;  %v267_v37 = vld [vmem:[#allocation3 + $0x148] sm:$0xff] }
  0xfd   :  { %579 = vmatprep.mubr.f32.mxu0 %v314_v38 }
 0x100   :  { %580 = vmatmul.mubr.f32.gmra.mrb[58].mxu0 %v313_v24  ;;  %v270_v24 = vld [vmem:[#allocation3 + $0x160] sm:$0xff] }
 0x101   :  { %584 = vmatprep.mubr.f32.mxu0 %v317_v40 }
 0x104   :  { %585 = vmatmul.mubr.f32.gmra.mrb[60].mxu0 %v316_v41 }
 0x105   :  { %589 = vmatprep.mubr.f32.mxu0 %v320_v42 }
 0x108   :  { %590 = vmatmul.mubr.f32.gmra.mrb[62].mxu0 %v319_v30  ;;  %v1127_v30 = vld [vmem:[#allocation8] sm:$0xff] }
 0x109   :  { %594 = vmatprep.mubr.f32.mxu0 %v323_v43  ;;  %v1128_v43 = vld [vmem:[#allocation8 + $0x8] sm:$0xff] }
 0x10c   :  { %595 = vmatmul.mubr.f32.gmra.mrb[64].mxu0 %v322_v44  ;;  %v273_v44 = vld [vmem:[#allocation3 + $0x178] sm:$0xff] }
 0x10d   :  { %599 = vmatprep.mubr.f32.mxu0 %v326_v45 }
 0x110   :  { %600 = vmatmul.mubr.f32.gmra.mrb[66].mxu0 %v325_v33  ;;  %v2476_v33 = vpack.c.bf16 %v1128_v43, %v1127_v30 }
 0x111   :  { %604 = vmatprep.mubr.f32.mxu0 %v329_v47 }
 0x112   :  { %2477 = vmatprep.subr.bf16.mxu1 %v2476_v33 }
 0x113   :  { %2479 = vmatpush3.bf16.msra.mxu1 %v2476_v33  ;;  %v1138_v33 = vld [vmem:[#allocation8 + $0x58] sm:$0xff] }
 0x114   :  { %605 = vmatmul.mubr.f32.gmra.mrb[68].mxu0 %v328_v48 }
 0x115   :  { %609 = vmatprep.mubr.f32.mxu0 %v332_v49 }
 0x118   :  { %610 = vmatmul.mubr.f32.gmra.mrb[70].mxu0 %v331_v39 }
 0x119   :  { %614 = vmatprep.mubr.f32.mxu0 %v335_v50 }
 0x11c   :  { %615 = vmatmul.mubr.f32.gmra.mrb[72].mxu0 %v334_v51 }
 0x11d   :  { %619 = vmatprep.mubr.f32.mxu0 %v338_v46 }
 0x120   :  { %620 = vmatmul.mubr.f32.gmra.mrb[74].mxu0 %v337_v53  ;;  %v1129_v53 = vld [vmem:[#allocation8 + $0x10] sm:$0xff] }
 0x121   :  { %624 = vmatprep.mubr.f32.mxu0 %v341_v54  ;;  %v1130_v54 = vld [vmem:[#allocation8 + $0x18] sm:$0xff] }
 0x124   :  { %625 = vmatmul.mubr.f32.gmra.mrb[76].mxu0 %v340_v55 }
 0x125   :  { %629 = vmatprep.mubr.f32.mxu0 %v344_v56  ;;  %v2480_v56 = vpack.c.bf16 %v1130_v54, %v1129_v53 }
 0x127   :  { %2481 = vmatprep.subr.bf16.mxu1 %v2480_v56 }
 0x128   :  { %630 = vmatmul.mubr.f32.gmra.mrb[78].mxu0 %v343_v52  ;;  %2483 = vmatpush3.bf16.msra.mxu1 %v2480_v56 }
 0x129   :  { %634 = vmatprep.mubr.f32.mxu0 %v347_v57 }
 0x12c   :  { %635 = vmatmul.mubr.f32.gmra.mrb[80].mxu0 %v346_v59 }
 0x12d   :  { %639 = vmatprep.mubr.f32.mxu0 %v350_v60 }
 0x130   :  { %640 = vmatmul.mubr.f32.gmra.mrb[82].mxu0 %v349_v61 }
 0x131   :  { %644 = vmatprep.mubr.f32.mxu0 %v353_v58 }
 0x134   :  { %645 = vmatmul.mubr.f32.gmra.mrb[84].mxu0 %v352_v62 }
 0x135   :  { %649 = vmatprep.mubr.f32.mxu0 %v356_v63  ;;  %v1131_v63 = vld [vmem:[#allocation8 + $0x20] sm:$0xff] }
 0x138   :  { %650 = vmatmul.mubr.f32.gmra.mrb[86].mxu0 %v355_v1  ;;  %v1132_v1 = vld [vmem:[#allocation8 + $0x28] sm:$0xff] }
 0x139   :  { %654 = vmatprep.mubr.f32.mxu0 %v359_v2 }
 0x13c   :  { %655 = vmatmul.mubr.f32.gmra.mrb[88].mxu0 %v358_v3  ;;  %v2484_v3 = vpack.c.bf16 %v1132_v1, %v1131_v63  ;;  %v1139_v63 = vld [vmem:[#allocation8 + $0x60] sm:$0xff]  ;;  %v1140_v1 = vld [vmem:[#allocation8 + $0x68] sm:$0xff] }
 0x13d   :  { %659 = vmatprep.mubr.f32.mxu0 %v362_v4 }
 0x13e   :  { %2485 = vmatprep.subr.bf16.mxu1 %v2484_v3 }
 0x13f   :  { %2487 = vmatpush3.bf16.msra.mxu1 %v2484_v3  ;;  %v2500_v3 = vpack.c.bf16 %v1140_v1, %v1139_v63 }
 0x140   :  { %660 = vmatmul.mubr.f32.gmra.mrb[90].mxu0 %v361_v5 }
 0x141   :  { %664 = vmatprep.mubr.f32.mxu0 %v365_v6 }
 0x144   :  { %665 = vmatmul.mubr.f32.gmra.mrb[92].mxu0 %v364_v7  ;;  %v2852_v13 = vpop.f32.mrb[0].mxu1 }
 0x145   :  { %669 = vmatprep.mubr.f32.mxu0 %v368_v8  ;;  %v2854_v15 = vpop.f32.mrb[1].mxu1 }
 0x148   :  { %670 = vmatmul.mubr.f32.gmra.mrb[94].mxu0 %v367_v9  ;;  %v2856_v17 = vpop.f32.mrb[2].mxu1 }
 0x149   :  { %2116 = vmatprep.mubr.f32.mxu0 %v228_v10  ;;  %v2858_v20 = vpop.f32.mrb[3].mxu1 }
 0x14c   :  { %2117 = vmatmul.mubr.f32.vlgmr.msra.gmra.mrb[96].mxu0 %v231_v11  ;;  %v2860_v22 = vpop.f32.mrb[4].mxu1  ;;  %v1133_v11 = vld [vmem:[#allocation8 + $0x30] sm:$0xff] }
 0x14d   :  { %2119 = vmatprep.mubr.f32.mxu0 %v234_v12  ;;  %v2862_v25 = vpop.f32.mrb[5].mxu1  ;;  %v1134_v12 = vld [vmem:[#allocation8 + $0x38] sm:$0xff] }
 0x150   :  { %2120 = vmatmul.mubr.f32.gmra.mrb[98].mxu0 %v237_v14  ;;  %v2864_v27 = vpop.f32.mrb[6].mxu1  ;;  %v2488_v14 = vpack.c.bf16 %v1134_v12, %v1133_v11 }
 0x151   :  { %2122 = vmatprep.mubr.f32.mxu0 %v240_v16  ;;  %v2866_v29 = vpop.f32.mrb[7].mxu1 }
 0x152   :  { %2489 = vmatprep.subr.bf16.mxu1 %v2488_v14 }
 0x153   :  { %2491 = vmatpush3.bf16.msra.mxu1 %v2488_v14 }
 0x154   :  { %2123 = vmatmul.mubr.f32.gmra.mrb[100].mxu0 %v243_v19  ;;  %v2868_v31 = vpop.f32.mrb[8].mxu1 }
 0x155   :  { %2125 = vmatprep.mubr.f32.mxu0 %v246_v21  ;;  %v2870_v34 = vpop.f32.mrb[9].mxu1 }
 0x158   :  { %2126 = vmatmul.mubr.f32.gmra.mrb[102].mxu0 %v249_v23  ;;  %v2874_v38 = vpop.f32.mrb[10].mxu1 }
 0x159   :  { %2128 = vmatprep.mubr.f32.mxu0 %v252_v26  ;;  %v2876_v40 = vpop.f32.mrb[11].mxu1 }
 0x15c   :  { %2129 = vmatmul.mubr.f32.gmra.mrb[104].mxu0 %v255_v28  ;;  %v2880_v45 = vpop.f32.mrb[12].mxu1 }
 0x15d   :  { %2131 = vmatprep.mubr.f32.mxu0 %v258_v0  ;;  %v2882_v47 = vpop.f32.mrb[13].mxu1  ;;  %v1135_v0 = vld [vmem:[#allocation8 + $0x40] sm:$0xff] }
 0x15f   :  { %v2872_v35 = vpop.f32.mrb[0].mxu0 }
 0x160   :  { %v438_v36 = vpop.f32.mrb[1].mxu0  ;;  %2132 = vmatmul.mubr.f32.gmra.mrb[106].mxu0 %v261_v32  ;;  %v1136_v32 = vld [vmem:[#allocation8 + $0x48] sm:$0xff] }
 0x161   :  { %2134 = vmatprep.mubr.f32.mxu0 %v264_v18  ;;  %v2886_v39 = vpop.f32.mrb[14].mxu1  ;;  %v2492_v18 = vpack.c.bf16 %v1136_v32, %v1135_v0  ;;  %v1142_v0 = vld [vmem:[#allocation8 + $0x78] sm:$0xff] }
 0x162   :  { %v2888_v50 = vpop.f32.mrb[15].mxu1 }
 0x163   :  { %v2878_v41 = vpop.f32.mrb[2].mxu0  ;;  %2493 = vmatprep.subr.bf16.mxu1 %v2492_v18 }
 0x164   :  { %v443_v42 = vpop.f32.mrb[3].mxu0  ;;  %2135 = vmatmul.mubr.f32.gmra.mrb[108].mxu0 %v267_v37  ;;  %2495 = vmatpush3.bf16.msra.mxu1 %v2492_v18 }
 0x165   :  { %2137 = vmatprep.mubr.f32.mxu0 %v270_v24  ;;  %v2892_v55 = vpop.f32.mrb[16].mxu1 }
 0x166   :  { %v2894_v52 = vpop.f32.mrb[17].mxu1 }
 0x167   :  { %v2884_v48 = vpop.f32.mrb[4].mxu0 }
 0x168   :  { %v448_v49 = vpop.f32.mrb[5].mxu0  ;;  %2138 = vmatmul.mubr.f32.gmra.mrb[110].mxu0 %v273_v44  ;;  %v1137_v44 = vld [vmem:[#allocation8 + $0x50] sm:$0xff] }
 0x169   :  { %v2898_v60 = vpop.f32.mrb[18].mxu1  ;;  %v2496_v49 = vpack.c.bf16 %v1138_v33, %v1137_v44 }
 0x16a   :  { %v2900_v61 = vpop.f32.mrb[19].mxu1 }
 0x16b   :  { %v2890_v51 = vpop.f32.mrb[6].mxu0  ;;  %2497 = vmatprep.subr.bf16.mxu1 %v2496_v49 }
 0x16c   :  { %v453_v46 = vpop.f32.mrb[7].mxu0  ;;  %2499 = vmatpush3.bf16.msra.mxu1 %v2496_v49 }
 0x16d   :  { %v2904_v2 = vpop.f32.mrb[20].mxu1  ;;  %2501 = vmatprep.subr.bf16.mxu1 %v2500_v3 }
 0x16e   :  { %v2906_v4 = vpop.f32.mrb[21].mxu1 }
 0x16f   :  { %v2896_v57 = vpop.f32.mrb[8].mxu0 }
 0x170   :  { %v458_v59 = vpop.f32.mrb[9].mxu0  ;;  %2503 = vmatpush3.bf16.msra.mxu1 %v2500_v3 }
 0x171   :  { %v2910_v7 = vpop.f32.mrb[22].mxu1 }
 0x172   :  { %v2912_v8 = vpop.f32.mrb[23].mxu1 }
 0x173   :  { %v2902_v58 = vpop.f32.mrb[10].mxu0 }
 0x174   :  { %v463_v62 = vpop.f32.mrb[11].mxu0 }
 0x176   :  { %v2916_v16 = vpop.f32.mrb[24].mxu1 }
 0x177   :  { %v2908_v5 = vpop.f32.mrb[12].mxu0  ;;  %v2920_v21 = vpop.f32.mrb[25].mxu1 }
 0x178   :  { %v468_v6 = vpop.f32.mrb[13].mxu0 }
 0x17a   :  { %v2924_v36 = vpop.f32.mrb[26].mxu1 }
 0x17b   :  { %v2914_v9 = vpop.f32.mrb[14].mxu0  ;;  %v2928_v24 = vpop.f32.mrb[27].mxu1 }
 0x17c   :  { %v473_v10 = vpop.f32.mrb[15].mxu0 }
 0x17e   :  { %v2932_v46 = vpop.f32.mrb[28].mxu1 }
 0x17f   :  { %v2918_v19 = vpop.f32.mrb[16].mxu0  ;;  %v2936_v54 = vpop.f32.mrb[29].mxu1 }
 0x180   :  { %v478_v23 = vpop.f32.mrb[17].mxu0 }
 0x182   :  { %v2940_v6 = vpop.f32.mrb[30].mxu1 }
 0x183   :  { %v2922_v26 = vpop.f32.mrb[18].mxu0  ;;  %v2944_v11 = vpop.f32.mrb[31].mxu1 }
 0x184   :  { %v483_v28 = vpop.f32.mrb[19].mxu0 }
 0x185   :  { %v1141_v28 = vld [vmem:[#allocation8 + $0x70] sm:$0xff] }
 0x186   :  { %v2504_v32 = vpack.c.bf16 %v1142_v0, %v1141_v28 }
 0x187   :  { %v2926_v37 = vpop.f32.mrb[20].mxu0 }
 0x188   :  { %v488_v42 = vpop.f32.mrb[21].mxu0  ;;  %2505 = vmatprep.subr.bf16.mxu1 %v2504_v32 }
 0x189   :  { %2507 = vmatpush3.bf16.msra.mxu1 %v2504_v32 }
 0x18b   :  { %v2930_v30 = vpop.f32.mrb[22].mxu0 }
 0x18c   :  { %v493_v43 = vpop.f32.mrb[23].mxu0 }
 0x18f   :  { %v2934_v53 = vpop.f32.mrb[24].mxu0 }
 0x190   :  { %v498_v56 = vpop.f32.mrb[25].mxu0 }
 0x193   :  { %v2938_v59 = vpop.f32.mrb[26].mxu0 }
 0x194   :  { %v503_v62 = vpop.f32.mrb[27].mxu0 }
 0x197   :  { %v2942_v10 = vpop.f32.mrb[28].mxu0 }
 0x198   :  { %v508_v12 = vpop.f32.mrb[29].mxu0 }
 0x19b   :  { %v2946_v14 = vpop.f32.mrb[30].mxu0 }
 0x19c   :  { %v513_v23 = vpop.f32.mrb[31].mxu0 }
 0x19f   :  { %v516_v18 = vpop.f32.mrb[32].mxu0 }
 0x1a0   :  { %v518_v42 = vpop.f32.mrb[33].mxu0  ;;  %v2949_v43 = vadd.f32 %v2854_v15, %v516_v18 }
 0x1a3   :  { %v521_v44 = vpop.f32.mrb[34].mxu0 }
 0x1a4   :  { %v2952_v33 = vadd.f32 %v2852_v13, %v521_v44  ;;  %v523_v49 = vpop.f32.mrb[35].mxu0 }
 0x1a7   :  { %v526_v56 = vpop.f32.mrb[36].mxu0 }
 0x1a8   :  { %v528_v62 = vpop.f32.mrb[37].mxu0  ;;  %v2955_v63 = vadd.f32 %v2858_v20, %v526_v56 }
 0x1ab   :  { %v531_v1 = vpop.f32.mrb[38].mxu0 }
 0x1ac   :  { %v2958_v3 = vadd.f32 %v2856_v17, %v531_v1  ;;  %v533_v12 = vpop.f32.mrb[39].mxu0 }
 0x1af   :  { %v536_v23 = vpop.f32.mrb[40].mxu0 }
 0x1b0   :  { %v538_v28 = vpop.f32.mrb[41].mxu0  ;;  %v2961_v15 = vadd.f32 %v2862_v25, %v536_v23 }
 0x1b3   :  { %v541_v0 = vpop.f32.mrb[42].mxu0 }
 0x1b4   :  { %v2964_v13 = vadd.f32 %v2860_v22, %v541_v0  ;;  %v543_v32 = vpop.f32.mrb[43].mxu0 }
 0x1b7   :  { %v546_v18 = vpop.f32.mrb[44].mxu0 }
 0x1b8   :  { %v548_v42 = vpop.f32.mrb[45].mxu0  ;;  %v2967_v20 = vadd.f32 %v2866_v29, %v546_v18 }
 0x1bb   :  { %v551_v44 = vpop.f32.mrb[46].mxu0 }
 0x1bc   :  { %v2970_v17 = vadd.f32 %v2864_v27, %v551_v44  ;;  %v553_v49 = vpop.f32.mrb[47].mxu0 }
 0x1bf   :  { %v556_v56 = vpop.f32.mrb[48].mxu0 }
 0x1c0   :  { %v558_v62 = vpop.f32.mrb[49].mxu0  ;;  %v2973_v25 = vadd.f32 %v2870_v34, %v556_v56 }
 0x1c3   :  { %v561_v1 = vpop.f32.mrb[50].mxu0 }
 0x1c4   :  { %v2976_v22 = vadd.f32 %v2868_v31, %v561_v1  ;;  %v563_v12 = vpop.f32.mrb[51].mxu0 }
 0x1c7   :  { %v566_v23 = vpop.f32.mrb[52].mxu0 }
 0x1c8   :  { %v568_v28 = vpop.f32.mrb[53].mxu0  ;;  %v2979_v29 = vadd.f32 %v2876_v40, %v566_v23 }
 0x1cb   :  { %v571_v0 = vpop.f32.mrb[54].mxu0 }
 0x1cc   :  { %v2982_v27 = vadd.f32 %v2874_v38, %v571_v0  ;;  %v573_v32 = vpop.f32.mrb[55].mxu0 }
 0x1cf   :  { %v576_v18 = vpop.f32.mrb[56].mxu0 }
 0x1d0   :  { %v578_v42 = vpop.f32.mrb[57].mxu0  ;;  %v2985_v34 = vadd.f32 %v2882_v47, %v576_v18 }
 0x1d3   :  { %v581_v44 = vpop.f32.mrb[58].mxu0 }
 0x1d4   :  { %v2988_v31 = vadd.f32 %v2880_v45, %v581_v44  ;;  %v583_v49 = vpop.f32.mrb[59].mxu0 }
 0x1d7   :  { %v586_v56 = vpop.f32.mrb[60].mxu0 }
 0x1d8   :  { %v588_v62 = vpop.f32.mrb[61].mxu0  ;;  %v2991_v40 = vadd.f32 %v2888_v50, %v586_v56 }
 0x1db   :  { %v591_v1 = vpop.f32.mrb[62].mxu0 }
 0x1dc   :  { %v2994_v38 = vadd.f32 %v2886_v39, %v591_v1  ;;  %v593_v12 = vpop.f32.mrb[63].mxu0 }
 0x1df   :  { %v596_v23 = vpop.f32.mrb[64].mxu0 }
 0x1e0   :  { %v598_v28 = vpop.f32.mrb[65].mxu0  ;;  %v2997_v47 = vadd.f32 %v2894_v52, %v596_v23 }
 0x1e3   :  { %v601_v0 = vpop.f32.mrb[66].mxu0 }
 0x1e4   :  { %v3000_v45 = vadd.f32 %v2892_v55, %v601_v0  ;;  %v603_v32 = vpop.f32.mrb[67].mxu0 }
 0x1e7   :  { %v606_v18 = vpop.f32.mrb[68].mxu0 }
 0x1e8   :  { %v608_v42 = vpop.f32.mrb[69].mxu0  ;;  %v3003_v50 = vadd.f32 %v2900_v61, %v606_v18 }
 0x1eb   :  { %v611_v44 = vpop.f32.mrb[70].mxu0 }
 0x1ec   :  { %v3006_v39 = vadd.f32 %v2898_v60, %v611_v44  ;;  %v613_v49 = vpop.f32.mrb[71].mxu0  ;;  %v1503_v44 = vld [vmem:[#allocation9] sm:$0xff] }
 0x1ed   :  { %v1504_v49 = vld [vmem:[#allocation9 + $0x8] sm:$0xff] }
 0x1ef   :  { %v616_v56 = vpop.f32.mrb[72].mxu0 }
 0x1f0   :  { %v618_v62 = vpop.f32.mrb[73].mxu0  ;;  %v3009_v52 = vadd.f32 %v2906_v4, %v616_v56 }
 0x1f3   :  { %v621_v1 = vpop.f32.mrb[74].mxu0 }
 0x1f4   :  { %v3012_v55 = vadd.f32 %v2904_v2, %v621_v1  ;;  %v623_v12 = vpop.f32.mrb[75].mxu0  ;;  %v2508_v2 = vpack.c.bf16 %v1504_v49, %v1503_v44 }
 0x1f6   :  { %2509 = vmatprep.subr.bf16.mxu1 %v2508_v2 }
 0x1f7   :  { %v626_v23 = vpop.f32.mrb[76].mxu0 }
 0x1f8   :  { %v628_v28 = vpop.f32.mrb[77].mxu0  ;;  %v3015_v61 = vadd.f32 %v2912_v8, %v626_v23 }
 0x1fb   :  { %v631_v0 = vpop.f32.mrb[78].mxu0 }
 0x1fc   :  { %v3018_v60 = vadd.f32 %v2910_v7, %v631_v0  ;;  %v633_v32 = vpop.f32.mrb[79].mxu0 }
 0x1ff   :  { %v636_v18 = vpop.f32.mrb[80].mxu0 }
 0x200   :  { %v638_v42 = vpop.f32.mrb[81].mxu0  ;;  %v3021_v4 = vadd.f32 %v2920_v21, %v636_v18 }
 0x203   :  { %v641_v56 = vpop.f32.mrb[82].mxu0 }
 0x204   :  { %v3024_v62 = vadd.f32 %v2916_v16, %v641_v56  ;;  %v643_v8 = vpop.f32.mrb[83].mxu0 }
 0x207   :  { %v646_v1 = vpop.f32.mrb[84].mxu0 }
 0x208   :  { %v648_v12 = vpop.f32.mrb[85].mxu0  ;;  %v3027_v7 = vadd.f32 %v2928_v24, %v646_v1 }
 0x20b   :  { %v651_v23 = vpop.f32.mrb[86].mxu0 }
 0x20c   :  { %v3030_v28 = vadd.f32 %v2924_v36, %v651_v23  ;;  %v653_v21 = vpop.f32.mrb[87].mxu0  ;;  %v1505_v23 = vld [vmem:[#allocation9 + $0x10] sm:$0xff] }
 0x20d   :  { %v1506_v21 = vld [vmem:[#allocation9 + $0x18] sm:$0xff] }
 0x20f   :  { %v656_v0 = vpop.f32.mrb[88].mxu0 }
 0x210   :  { %v658_v32 = vpop.f32.mrb[89].mxu0  ;;  %v3033_v18 = vadd.f32 %v2936_v54, %v656_v0 }
 0x211   :  { %v2512_v32 = vpack.c.bf16 %v1506_v21, %v1505_v23 }
 0x213   :  { %v661_v42 = vpop.f32.mrb[90].mxu0 }
 0x214   :  { %v3036_v16 = vadd.f32 %v2932_v46, %v661_v42  ;;  %v663_v44 = vpop.f32.mrb[91].mxu0 }
 0x215   :  { %v1507_v44 = vld [vmem:[#allocation9 + $0x20] sm:$0xff] }
 0x217   :  { %v666_v49 = vpop.f32.mrb[92].mxu0 }
 0x218   :  { %v668_v56 = vpop.f32.mrb[93].mxu0  ;;  %v3039_v24 = vadd.f32 %v2944_v11, %v666_v49 }
 0x219   :  { %v1508_v56 = vld [vmem:[#allocation9 + $0x28] sm:$0xff] }
 0x21b   :  { %v671_v8 = vpop.f32.mrb[94].mxu0 }
 0x21c   :  { %v3042_v36 = vadd.f32 %v2940_v6, %v671_v8  ;;  %v673_v1 = vpop.f32.mrb[95].mxu0  ;;  %v2516_v8 = vpack.c.bf16 %v1508_v56, %v1507_v44  ;;  %v1513_v56 = vld [vmem:[#allocation9 + $0x50] sm:$0xff] }
 0x21f   :  { %v2118_v12 = vpop.f32.mrb[96].mxu0 }
 0x220   :  { %v747_v54 = vadd.f32 %v2118_v12, %v2878_v41  ;;  %v741_v0 = vpop.f32.mrb[97].mxu0  ;;  %v1509_v41 = vld [vmem:[#allocation9 + $0x30] sm:$0xff]  ;;  %v1510_v12 = vld [vmem:[#allocation9 + $0x38] sm:$0xff] }
 0x221   :  { %v742_v46 = vadd.f32 %v741_v0, %v2872_v35 }
 0x223   :  { %v2121_v42 = vpop.f32.mrb[98].mxu0  ;;  %2220 = vmatprep.mubr.f32.mxu1 %v742_v46 }
 0x224   :  { %v757_v11 = vadd.f32 %v2121_v42, %v2890_v51  ;;  %v751_v49 = vpop.f32.mrb[99].mxu0  ;;  %2221 = vmatmul.mubr.f32.vlgmr.msra.gmra.mrb[32].mxu1 %v747_v54  ;;  %v2520_v51 = vpack.c.bf16 %v1510_v12, %v1509_v41  ;;  %v1511_v54 = vld [vmem:[#allocation9 + $0x40] sm:$0xff] }
 0x225   :  { %v752_v6 = vadd.f32 %v751_v49, %v2884_v48  ;;  %2511 = vmatpush3.bf16.msra.mxu1 %v2508_v2  ;;  %v1512_v48 = vld [vmem:[#allocation9 + $0x48] sm:$0xff] }
 0x226   :  { %2513 = vmatprep.subr.bf16.mxu1 %v2512_v32 }
 0x227   :  { %v2124_v1 = vpop.f32.mrb[100].mxu0  ;;  %2223 = vmatprep.mubr.f32.mxu1 %v752_v6 }
 0x228   :  { %v767_v35 = vadd.f32 %v2124_v1, %v2902_v58  ;;  %v761_v23 = vpop.f32.mrb[101].mxu0  ;;  %2224 = vmatmul.mubr.f32.gmra.mrb[34].mxu1 %v757_v11  ;;  %v2524_v58 = vpack.c.bf16 %v1512_v48, %v1511_v54  ;;  %v1515_v1 = vld [vmem:[#allocation9 + $0x60] sm:$0xff] }
 0x229   :  { %v762_v21 = vadd.f32 %v761_v23, %v2896_v57  ;;  %2515 = vmatpush3.bf16.msra.mxu1 %v2512_v32  ;;  %v1514_v57 = vld [vmem:[#allocation9 + $0x58] sm:$0xff]  ;;  %v1517_v23 = vld [vmem:[#allocation9 + $0x70] sm:$0xff] }
 0x22a   :  { %2517 = vmatprep.subr.bf16.mxu1 %v2516_v8 }
 0x22b   :  { %v2127_v0 = vpop.f32.mrb[102].mxu0  ;;  %2226 = vmatprep.mubr.f32.mxu1 %v762_v21 }
 0x22c   :  { %v777_v2 = vadd.f32 %v2127_v0, %v2914_v9  ;;  %v771_v46 = vpop.f32.mrb[103].mxu0  ;;  %2227 = vmatmul.mubr.f32.gmra.mrb[36].mxu1 %v767_v35  ;;  %v2528_v9 = vpack.c.bf16 %v1514_v57, %v1513_v56 }
 0x22d   :  { %v772_v42 = vadd.f32 %v771_v46, %v2908_v5  ;;  %2519 = vmatpush3.bf16.msra.mxu1 %v2516_v8  ;;  %v1516_v5 = vld [vmem:[#allocation9 + $0x68] sm:$0xff] }
 0x22e   :  { %2521 = vmatprep.subr.bf16.mxu1 %v2520_v51 }
 0x22f   :  { %v2130_v44 = vpop.f32.mrb[104].mxu0  ;;  %2229 = vmatprep.mubr.f32.mxu1 %v772_v42 }
 0x230   :  { %v787_v32 = vadd.f32 %v2130_v44, %v2922_v26  ;;  %v781_v11 = vpop.f32.mrb[105].mxu0  ;;  %2230 = vmatmul.mubr.f32.gmra.mrb[38].mxu1 %v777_v2  ;;  %v2532_v26 = vpack.c.bf16 %v1516_v5, %v1515_v1 }
 0x231   :  { %v782_v49 = vadd.f32 %v781_v11, %v2918_v19  ;;  %2523 = vmatpush3.bf16.msra.mxu1 %v2520_v51  ;;  %v1518_v19 = vld [vmem:[#allocation9 + $0x78] sm:$0xff] }
 0x232   :  { %2525 = vmatprep.subr.bf16.mxu1 %v2524_v58 }
 0x233   :  { %v2133_v6 = vpop.f32.mrb[106].mxu0  ;;  %2232 = vmatprep.mubr.f32.mxu1 %v782_v49 }
 0x234   :  { %v797_v8 = vadd.f32 %v2133_v6, %v2930_v30  ;;  %v791_v41 = vpop.f32.mrb[107].mxu0  ;;  %2233 = vmatmul.mubr.f32.gmra.mrb[40].mxu1 %v787_v32  ;;  %v2536_v30 = vpack.c.bf16 %v1518_v19, %v1517_v23 }
 0x235   :  { %v792_v12 = vadd.f32 %v791_v41, %v2926_v37  ;;  %2527 = vmatpush3.bf16.msra.mxu1 %v2524_v58 }
 0x236   :  { %2529 = vmatprep.subr.bf16.mxu1 %v2528_v9 }
 0x237   :  { %v2136_v35 = vpop.f32.mrb[108].mxu0  ;;  %2235 = vmatprep.mubr.f32.mxu1 %v792_v12 }
 0x238   :  { %v807_v21 = vadd.f32 %v2136_v35, %v2938_v59  ;;  %v801_v51 = vpop.f32.mrb[109].mxu0  ;;  %2236 = vmatmul.mubr.f32.gmra.mrb[42].mxu1 %v797_v8 }
 0x239   :  { %v802_v0 = vadd.f32 %v801_v51, %v2934_v53  ;;  %2531 = vmatpush3.bf16.msra.mxu1 %v2528_v9  ;;  %v3095_v53 = vld [vmem:[%s3163_s3] ss:$0 sm:$0xff]  ;;  %s2693_s3 = smov [#allocation11]  }
 0x23a   :  { %2533 = vmatprep.subr.bf16.mxu1 %v2532_v26  ;;  %s1877_s19 = sshll.u32 %s2693_s3, 4  ;;  %s1878_s19 = int_to_ptr.vmem [resolvable:$true] %s1877_s19 }
 0x23b   :  { %v2139_v54 = vpop.f32.mrb[110].mxu0  ;;  %2238 = vmatprep.mubr.f32.mxu1 %v802_v0  ;;  %s2654_s20 = scalar_lea.vmem %s1878_s19, 6144  ;;  %p2659_p5 = scmp.lt.s32.totalorder %s1878_s19, %s1878_s19 }
 0x23c   :  { %v817_v37 = vadd.f32 %v2139_v54, %v2946_v14  ;;  %v811_v48 = vpop.f32.mrb[111].mxu0  ;;  %2239 = vmatmul.mubr.f32.gmra.mrb[44].mxu1 %v807_v21  ;;  %p2655_p4 = scmp.ne.s32.totalorder %s1878_s19, %s2654_s20  ;;  %p2660_p6 = scmp.lt.s32.totalorder %s2654_s20, %s2654_s20 }
 0x23d   :  { %v812_v2 = vadd.f32 %v811_v48, %v2942_v10  ;;  %2535 = vmatpush3.bf16.msra.mxu1 %v2532_v26 }
 0x23e   :  { %2537 = vmatprep.subr.bf16.mxu1 %v2536_v30  ;;  %p2661_p7 = por %p2660_p6, %p2659_p5 }
 0x23f   :  { %2241 = vmatprep.mubr.f32.mxu1 %v812_v2 }
 0x240   :  { %2242 = vmatmul.mubr.f32.gmra.mrb[46].mxu1 %v817_v37  ;;  %p2662_p8 = pnand %p2661_p7, %p2655_p4 }
 0x241   :  { %2244 = vmatprep.mubr.f32.mxu1 %v2949_v43  ;;  %2539 = vmatpush3.bf16.msra.mxu1 %v2536_v30 }
 0x244   :  { %2245 = vmatmul.mubr.f32.gmra.mrb[48].mxu1 %v2952_v33 }
 0x245   :  { %2247 = vmatprep.mubr.f32.mxu1 %v2955_v63 }
 0x248   :  { %2248 = vmatmul.mubr.f32.gmra.mrb[50].mxu1 %v2958_v3 }
 0x249   :  { %2250 = vmatprep.mubr.f32.mxu1 %v2961_v15 }
 0x24c   :  { %2251 = vmatmul.mubr.f32.gmra.mrb[52].mxu1 %v2964_v13 }
 0x24d   :  { %2253 = vmatprep.mubr.f32.mxu1 %v2967_v20 }
 0x250   :  { %2254 = vmatmul.mubr.f32.gmra.mrb[54].mxu1 %v2970_v17 }
 0x251   :  { %2256 = vmatprep.mubr.f32.mxu1 %v2973_v25 }
 0x254   :  { %2257 = vmatmul.mubr.f32.gmra.mrb[56].mxu1 %v2976_v22 }
 0x255   :  { %2259 = vmatprep.mubr.f32.mxu1 %v2979_v29 }
 0x258   :  { %2260 = vmatmul.mubr.f32.gmra.mrb[58].mxu1 %v2982_v27 }
 0x259   :  { %2262 = vmatprep.mubr.f32.mxu1 %v2985_v34 }
 0x25c   :  { %2263 = vmatmul.mubr.f32.gmra.mrb[60].mxu1 %v2988_v31 }
 0x25d   :  { %2265 = vmatprep.mubr.f32.mxu1 %v2991_v40 }
 0x260   :  { %2266 = vmatmul.mubr.f32.gmra.mrb[62].mxu1 %v2994_v38 }
 0x261   :  { %2268 = vmatprep.mubr.f32.mxu1 %v2997_v47 }
 0x264   :  { %2269 = vmatmul.mubr.f32.gmra.mrb[64].mxu1 %v3000_v45 }
 0x265   :  { %2271 = vmatprep.mubr.f32.mxu1 %v3003_v50 }
 0x268   :  { %2272 = vmatmul.mubr.f32.gmra.mrb[66].mxu1 %v3006_v39 }
 0x269   :  { %2274 = vmatprep.mubr.f32.mxu1 %v3009_v52 }
 0x26c   :  { %2275 = vmatmul.mubr.f32.gmra.mrb[68].mxu1 %v3012_v55 }
 0x26d   :  { %2277 = vmatprep.mubr.f32.mxu1 %v3015_v61 }
 0x270   :  { %2278 = vmatmul.mubr.f32.gmra.mrb[70].mxu1 %v3018_v60 }
 0x271   :  { %2280 = vmatprep.mubr.f32.mxu1 %v3021_v4 }
 0x274   :  { %2281 = vmatmul.mubr.f32.gmra.mrb[72].mxu1 %v3024_v62 }
 0x275   :  { %2283 = vmatprep.mubr.f32.mxu1 %v3027_v7 }
 0x278   :  { %2284 = vmatmul.mubr.f32.gmra.mrb[74].mxu1 %v3030_v28 }
 0x279   :  { %2286 = vmatprep.mubr.f32.mxu1 %v3033_v18 }
 0x27c   :  { %2287 = vmatmul.mubr.f32.gmra.mrb[76].mxu1 %v3036_v16 }
 0x27d   :  { %2289 = vmatprep.mubr.f32.mxu1 %v3039_v24 }
 0x280   :  { %2290 = vmatmul.mubr.f32.gmra.mrb[78].mxu1 %v3042_v36 }
 0x2f7   :  { %v2222_v59 = vpop.f32.mrb[32].mxu1 }
 0x2f8   :  { %v1222_v10 = vadd.f32 %v2222_v59, %v3095_v53  ;;  %v1216_v14 = vpop.f32.mrb[33].mxu1 }
 0x2f9   :  { %v1217_v43 = vadd.f32 %v3095_v53, %v1216_v14 }
 0x2fa   :  { %v1456_v3 = vmax.f32 %v1222_v10, 0.0 }
 0x2fb   :  { %v1455_v33 = vmax.f32 %v1217_v43, 0.0  ;;  %v2225_v63 = vpop.f32.mrb[34].mxu1 }
 0x2fc   :  { %v1232_v15 = vadd.f32 %v2225_v63, %v3095_v53  ;;  %v1226_v13 = vpop.f32.mrb[35].mxu1 }
 0x2fd   :  { %v1227_v20 = vadd.f32 %v3095_v53, %v1226_v13  ;;  %2324 = vmatprep.mubr.f32.mxu1 %v1455_v33 }
 0x2fe   :  { %2325 = vmatmul.mubr.f32.vlgmr.msra.gmra.mrb[80].mxu1 %v1456_v3  ;;  %v1458_v22 = vmax.f32 %v1232_v15, 0.0 }
 0x2ff   :  { %v1457_v17 = vmax.f32 %v1227_v20, 0.0  ;;  %v2228_v25 = vpop.f32.mrb[36].mxu1 }
 0x300   :  { %v1242_v29 = vadd.f32 %v2228_v25, %v3095_v53  ;;  %v1236_v27 = vpop.f32.mrb[37].mxu1 }
 0x301   :  { %v1237_v34 = vadd.f32 %v3095_v53, %v1236_v27  ;;  %2327 = vmatprep.mubr.f32.mxu1 %v1457_v17 }
 0x302   :  { %2328 = vmatmul.mubr.f32.gmra.mrb[82].mxu1 %v1458_v22  ;;  %v1460_v38 = vmax.f32 %v1242_v29, 0.0 }
 0x303   :  { %v1459_v31 = vmax.f32 %v1237_v34, 0.0  ;;  %v2231_v40 = vpop.f32.mrb[38].mxu1 }
 0x304   :  { %v1252_v47 = vadd.f32 %v2231_v40, %v3095_v53  ;;  %v1246_v45 = vpop.f32.mrb[39].mxu1 }
 0x305   :  { %v1247_v50 = vadd.f32 %v3095_v53, %v1246_v45  ;;  %2330 = vmatprep.mubr.f32.mxu1 %v1459_v31 }
 0x306   :  { %2331 = vmatmul.mubr.f32.gmra.mrb[84].mxu1 %v1460_v38  ;;  %v1462_v55 = vmax.f32 %v1252_v47, 0.0 }
 0x307   :  { %v1461_v39 = vmax.f32 %v1247_v50, 0.0  ;;  %v2234_v52 = vpop.f32.mrb[40].mxu1 }
 0x308   :  { %v1262_v61 = vadd.f32 %v2234_v52, %v3095_v53  ;;  %v1256_v60 = vpop.f32.mrb[41].mxu1 }
 0x309   :  { %v1257_v4 = vadd.f32 %v3095_v53, %v1256_v60  ;;  %2333 = vmatprep.mubr.f32.mxu1 %v1461_v39 }
 0x30a   :  { %2334 = vmatmul.mubr.f32.gmra.mrb[86].mxu1 %v1462_v55  ;;  %v1464_v28 = vmax.f32 %v1262_v61, 0.0 }
 0x30b   :  { %v1463_v62 = vmax.f32 %v1257_v4, 0.0  ;;  %v2237_v7 = vpop.f32.mrb[42].mxu1 }
 0x30c   :  { %v1272_v18 = vadd.f32 %v2237_v7, %v3095_v53  ;;  %v1266_v16 = vpop.f32.mrb[43].mxu1 }
 0x30d   :  { %v1267_v24 = vadd.f32 %v3095_v53, %v1266_v16  ;;  %2336 = vmatprep.mubr.f32.mxu1 %v1463_v62 }
 0x30e   :  { %2337 = vmatmul.mubr.f32.gmra.mrb[88].mxu1 %v1464_v28  ;;  %v1466_v42 = vmax.f32 %v1272_v18, 0.0 }
 0x30f   :  { %v1465_v36 = vmax.f32 %v1267_v24, 0.0  ;;  %v2240_v46 = vpop.f32.mrb[44].mxu1 }
 0x310   :  { %v1282_v58 = vadd.f32 %v2240_v46, %v3095_v53  ;;  %v1276_v44 = vpop.f32.mrb[45].mxu1 }
 0x311   :  { %v1277_v56 = vadd.f32 %v3095_v53, %v1276_v44  ;;  %2339 = vmatprep.mubr.f32.mxu1 %v1465_v36 }
 0x312   :  { %2340 = vmatmul.mubr.f32.gmra.mrb[90].mxu1 %v1466_v42  ;;  %v1468_v11 = vmax.f32 %v1282_v58, 0.0 }
 0x313   :  { %v1467_v57 = vmax.f32 %v1277_v56, 0.0  ;;  %v2243_v32 = vpop.f32.mrb[46].mxu1 }
 0x314   :  { %v1292_v49 = vadd.f32 %v2243_v32, %v3095_v53  ;;  %v1286_v9 = vpop.f32.mrb[47].mxu1 }
 0x315   :  { %v1287_v6 = vadd.f32 %v3095_v53, %v1286_v9  ;;  %2342 = vmatprep.mubr.f32.mxu1 %v1467_v57 }
 0x316   :  { %2343 = vmatmul.mubr.f32.gmra.mrb[92].mxu1 %v1468_v11  ;;  %v1470_v8 = vmax.f32 %v1292_v49, 0.0 }
 0x317   :  { %v1469_v1 = vmax.f32 %v1287_v6, 0.0  ;;  %v2246_v5 = vpop.f32.mrb[48].mxu1 }
 0x318   :  { %v1302_v41 = vadd.f32 %v2246_v5, %v3095_v53  ;;  %v1296_v12 = vpop.f32.mrb[49].mxu1 }
 0x319   :  { %v1297_v26 = vadd.f32 %v3095_v53, %v1296_v12  ;;  %2345 = vmatprep.mubr.f32.mxu1 %v1469_v1 }
 0x31a   :  { %2346 = vmatmul.mubr.f32.gmra.mrb[94].mxu1 %v1470_v8  ;;  %v1472_v19 = vmax.f32 %v1302_v41, 0.0 }
 0x31b   :  { %v1471_v35 = vmax.f32 %v1297_v26, 0.0  ;;  %v2249_v23 = vpop.f32.mrb[50].mxu1 }
 0x31c   :  { %v1312_v21 = vadd.f32 %v2249_v23, %v3095_v53  ;;  %v1306_v51 = vpop.f32.mrb[51].mxu1 }
 0x31d   :  { %v1307_v0 = vadd.f32 %v3095_v53, %v1306_v51  ;;  %2348 = vmatprep.mubr.f32.mxu1 %v1471_v35 }
 0x31e   :  { %2349 = vmatmul.mubr.f32.gmra.mrb[96].mxu1 %v1472_v19  ;;  %v1474_v37 = vmax.f32 %v1312_v21, 0.0 }
 0x31f   :  { %v1473_v30 = vmax.f32 %v1307_v0, 0.0  ;;  %v2252_v54 = vpop.f32.mrb[52].mxu1 }
 0x320   :  { %v1322_v48 = vadd.f32 %v2252_v54, %v3095_v53  ;;  %v1316_v2 = vpop.f32.mrb[53].mxu1 }
 0x321   :  { %v1317_v59 = vadd.f32 %v3095_v53, %v1316_v2  ;;  %2351 = vmatprep.mubr.f32.mxu1 %v1473_v30 }
 0x322   :  { %2352 = vmatmul.mubr.f32.gmra.mrb[98].mxu1 %v1474_v37  ;;  %v1476_v43 = vmax.f32 %v1322_v48, 0.0 }
 0x323   :  { %v1475_v10 = vmax.f32 %v1317_v59, 0.0  ;;  %v2255_v14 = vpop.f32.mrb[54].mxu1 }
 0x324   :  { %v1332_v33 = vadd.f32 %v2255_v14, %v3095_v53  ;;  %v1326_v63 = vpop.f32.mrb[55].mxu1 }
 0x325   :  { %v1327_v3 = vadd.f32 %v3095_v53, %v1326_v63  ;;  %2354 = vmatprep.mubr.f32.mxu1 %v1475_v10 }
 0x326   :  { %2355 = vmatmul.mubr.f32.gmra.mrb[100].mxu1 %v1476_v43  ;;  %v1478_v20 = vmax.f32 %v1332_v33, 0.0 }
 0x327   :  { %v1477_v15 = vmax.f32 %v1327_v3, 0.0  ;;  %v2258_v13 = vpop.f32.mrb[56].mxu1 }
 0x328   :  { %v1342_v17 = vadd.f32 %v2258_v13, %v3095_v53  ;;  %v1336_v25 = vpop.f32.mrb[57].mxu1 }
 0x329   :  { %v1337_v22 = vadd.f32 %v3095_v53, %v1336_v25  ;;  %2357 = vmatprep.mubr.f32.mxu1 %v1477_v15 }
 0x32a   :  { %2358 = vmatmul.mubr.f32.gmra.mrb[102].mxu1 %v1478_v20  ;;  %v1480_v34 = vmax.f32 %v1342_v17, 0.0 }
 0x32b   :  { %v1479_v29 = vmax.f32 %v1337_v22, 0.0  ;;  %v2261_v27 = vpop.f32.mrb[58].mxu1 }
 0x32c   :  { %v1352_v31 = vadd.f32 %v2261_v27, %v3095_v53  ;;  %v1346_v40 = vpop.f32.mrb[59].mxu1 }
 0x32d   :  { %v1347_v38 = vadd.f32 %v3095_v53, %v1346_v40  ;;  %2360 = vmatprep.mubr.f32.mxu1 %v1479_v29 }
 0x32e   :  { %2361 = vmatmul.mubr.f32.gmra.mrb[104].mxu1 %v1480_v34  ;;  %v1482_v50 = vmax.f32 %v1352_v31, 0.0 }
 0x32f   :  { %v1481_v47 = vmax.f32 %v1347_v38, 0.0  ;;  %v2264_v45 = vpop.f32.mrb[60].mxu1 }
 0x330   :  { %v1362_v39 = vadd.f32 %v2264_v45, %v3095_v53  ;;  %v1356_v52 = vpop.f32.mrb[61].mxu1 }
 0x331   :  { %v1357_v55 = vadd.f32 %v3095_v53, %v1356_v52  ;;  %2363 = vmatprep.mubr.f32.mxu1 %v1481_v47 }
 0x332   :  { %2364 = vmatmul.mubr.f32.gmra.mrb[106].mxu1 %v1482_v50  ;;  %v1484_v4 = vmax.f32 %v1362_v39, 0.0 }
 0x333   :  { %v1483_v61 = vmax.f32 %v1357_v55, 0.0  ;;  %v2267_v60 = vpop.f32.mrb[62].mxu1 }
 0x334   :  { %v1372_v62 = vadd.f32 %v2267_v60, %v3095_v53  ;;  %v1366_v7 = vpop.f32.mrb[63].mxu1 }
 0x335   :  { %v1367_v28 = vadd.f32 %v3095_v53, %v1366_v7  ;;  %2366 = vmatprep.mubr.f32.mxu1 %v1483_v61 }
 0x336   :  { %2367 = vmatmul.mubr.f32.gmra.mrb[108].mxu1 %v1484_v4  ;;  %v1486_v24 = vmax.f32 %v1372_v62, 0.0 }
 0x337   :  { %v1485_v18 = vmax.f32 %v1367_v28, 0.0  ;;  %v2270_v16 = vpop.f32.mrb[64].mxu1 }
 0x338   :  { %v1382_v36 = vadd.f32 %v2270_v16, %v3095_v53  ;;  %v1376_v46 = vpop.f32.mrb[65].mxu1 }
 0x339   :  { %v1377_v42 = vadd.f32 %v3095_v53, %v1376_v46  ;;  %2369 = vmatprep.mubr.f32.mxu1 %v1485_v18 }
 0x33a   :  { %2370 = vmatmul.mubr.f32.gmra.mrb[110].mxu1 %v1486_v24  ;;  %v1488_v56 = vmax.f32 %v1382_v36, 0.0 }
 0x33b   :  { %v1487_v58 = vmax.f32 %v1377_v42, 0.0  ;;  %v2273_v44 = vpop.f32.mrb[66].mxu1 }
 0x33c   :  { %v1392_v57 = vadd.f32 %v2273_v44, %v3095_v53  ;;  %v1386_v32 = vpop.f32.mrb[67].mxu1 }
 0x33d   :  { %v1387_v11 = vadd.f32 %v3095_v53, %v1386_v32  ;;  %2372 = vmatprep.mubr.f32.mxu1 %v1487_v58 }
 0x33e   :  { %2373 = vmatmul.mubr.f32.gmra.mrb[112].mxu1 %v1488_v56  ;;  %v1490_v6 = vmax.f32 %v1392_v57, 0.0 }
 0x33f   :  { %v1489_v49 = vmax.f32 %v1387_v11, 0.0  ;;  %v2276_v9 = vpop.f32.mrb[68].mxu1 }
 0x340   :  { %v1402_v1 = vadd.f32 %v2276_v9, %v3095_v53  ;;  %v1396_v5 = vpop.f32.mrb[69].mxu1 }
 0x341   :  { %v1397_v8 = vadd.f32 %v3095_v53, %v1396_v5  ;;  %2375 = vmatprep.mubr.f32.mxu1 %v1489_v49 }
 0x342   :  { %2376 = vmatmul.mubr.f32.gmra.mrb[114].mxu1 %v1490_v6  ;;  %v1492_v26 = vmax.f32 %v1402_v1, 0.0 }
 0x343   :  { %v1491_v41 = vmax.f32 %v1397_v8, 0.0  ;;  %v2279_v12 = vpop.f32.mrb[70].mxu1 }
 0x344   :  { %v1412_v35 = vadd.f32 %v2279_v12, %v3095_v53  ;;  %v1406_v23 = vpop.f32.mrb[71].mxu1 }
 0x345   :  { %v1407_v19 = vadd.f32 %v3095_v53, %v1406_v23  ;;  %2378 = vmatprep.mubr.f32.mxu1 %v1491_v41 }
 0x346   :  { %2379 = vmatmul.mubr.f32.gmra.mrb[116].mxu1 %v1492_v26  ;;  %v1494_v0 = vmax.f32 %v1412_v35, 0.0 }
 0x347   :  { %v1493_v21 = vmax.f32 %v1407_v19, 0.0  ;;  %v2282_v51 = vpop.f32.mrb[72].mxu1 }
 0x348   :  { %v1422_v30 = vadd.f32 %v2282_v51, %v3095_v53  ;;  %v1416_v54 = vpop.f32.mrb[73].mxu1 }
 0x349   :  { %v1417_v37 = vadd.f32 %v3095_v53, %v1416_v54  ;;  %2381 = vmatprep.mubr.f32.mxu1 %v1493_v21 }
 0x34a   :  { %2382 = vmatmul.mubr.f32.gmra.mrb[118].mxu1 %v1494_v0  ;;  %v1496_v59 = vmax.f32 %v1422_v30, 0.0 }
 0x34b   :  { %v1495_v48 = vmax.f32 %v1417_v37, 0.0  ;;  %v2285_v2 = vpop.f32.mrb[74].mxu1 }
 0x34c   :  { %v1432_v10 = vadd.f32 %v2285_v2, %v3095_v53  ;;  %v1426_v14 = vpop.f32.mrb[75].mxu1 }
 0x34d   :  { %v1427_v43 = vadd.f32 %v3095_v53, %v1426_v14  ;;  %2384 = vmatprep.mubr.f32.mxu1 %v1495_v48 }
 0x34e   :  { %2385 = vmatmul.mubr.f32.gmra.mrb[120].mxu1 %v1496_v59  ;;  %v1498_v3 = vmax.f32 %v1432_v10, 0.0 }
 0x34f   :  { %v1497_v33 = vmax.f32 %v1427_v43, 0.0  ;;  %v2288_v63 = vpop.f32.mrb[76].mxu1 }
 0x350   :  { %v1442_v15 = vadd.f32 %v2288_v63, %v3095_v53  ;;  %v1436_v13 = vpop.f32.mrb[77].mxu1 }
 0x351   :  { %v1437_v20 = vadd.f32 %v3095_v53, %v1436_v13  ;;  %2387 = vmatprep.mubr.f32.mxu1 %v1497_v33 }
 0x352   :  { %2388 = vmatmul.mubr.f32.gmra.mrb[122].mxu1 %v1498_v3  ;;  %v1500_v22 = vmax.f32 %v1442_v15, 0.0 }
 0x353   :  { %v1499_v17 = vmax.f32 %v1437_v20, 0.0  ;;  %v2291_v25 = vpop.f32.mrb[78].mxu1 }
 0x354   :  { %v1452_v29 = vadd.f32 %v2291_v25, %v3095_v53  ;;  %v1446_v27 = vpop.f32.mrb[79].mxu1 }
 0x355   :  { %v1447_v34 = vadd.f32 %v3095_v53, %v1446_v27  ;;  %2390 = vmatprep.mubr.f32.mxu1 %v1499_v17 }
 0x356   :  { %2391 = vmatmul.mubr.f32.gmra.mrb[124].mxu1 %v1500_v22  ;;  %v1502_v40 = vmax.f32 %v1452_v29, 0.0 }
 0x357   :  { %v1501_v31 = vmax.f32 %v1447_v34, 0.0 }
 0x359   :  { %2393 = vmatprep.mubr.f32.mxu1 %v1501_v31 }
 0x35a   :  { %2394 = vmatmul.mubr.f32.gmra.mrb[126].mxu1 %v1502_v40 }
 0x3d1   :  { %v2326_v38 = vpop.f32.mrb[80].mxu1 }
 0x3d2   :  { %1825 = vst [vmem:[#allocation11 + $0x8] sm:$0xff] %v2326_v38  ;;  %v1585_v47 = vpop.f32.mrb[81].mxu1 }
 0x3d3   :  { %1824 = vst [vmem:[#allocation11] sm:$0xff] %v1585_v47 }
 0x3d5   :  { %v2329_v45 = vpop.f32.mrb[82].mxu1 }
 0x3d6   :  { %1827 = vst [vmem:[#allocation11 + $0x18] sm:$0xff] %v2329_v45  ;;  %v1595_v50 = vpop.f32.mrb[83].mxu1 }
 0x3d7   :  { %1826 = vst [vmem:[#allocation11 + $0x10] sm:$0xff] %v1595_v50 }
 0x3d9   :  { %v2332_v39 = vpop.f32.mrb[84].mxu1 }
 0x3da   :  { %1829 = vst [vmem:[#allocation11 + $0x28] sm:$0xff] %v2332_v39  ;;  %v1605_v52 = vpop.f32.mrb[85].mxu1 }
 0x3db   :  { %1828 = vst [vmem:[#allocation11 + $0x20] sm:$0xff] %v1605_v52 }
 0x3dd   :  { %v2335_v55 = vpop.f32.mrb[86].mxu1 }
 0x3de   :  { %1831 = vst [vmem:[#allocation11 + $0x38] sm:$0xff] %v2335_v55  ;;  %v1615_v53 = vpop.f32.mrb[87].mxu1 }
 0x3df   :  { %1830 = vst [vmem:[#allocation11 + $0x30] sm:$0xff] %v1615_v53 }
 0x3e1   :  { %v2338_v61 = vpop.f32.mrb[88].mxu1 }
 0x3e2   :  { %1833 = vst [vmem:[#allocation11 + $0x48] sm:$0xff] %v2338_v61  ;;  %v1625_v60 = vpop.f32.mrb[89].mxu1 }
 0x3e3   :  { %1832 = vst [vmem:[#allocation11 + $0x40] sm:$0xff] %v1625_v60 }
 0x3e5   :  { %v2341_v4 = vpop.f32.mrb[90].mxu1 }
 0x3e6   :  { %1835 = vst [vmem:[#allocation11 + $0x58] sm:$0xff] %v2341_v4  ;;  %v1635_v62 = vpop.f32.mrb[91].mxu1 }
 0x3e7   :  { %1834 = vst [vmem:[#allocation11 + $0x50] sm:$0xff] %v1635_v62 }
 0x3e9   :  { %v2344_v7 = vpop.f32.mrb[92].mxu1 }
 0x3ea   :  { %1837 = vst [vmem:[#allocation11 + $0x68] sm:$0xff] %v2344_v7  ;;  %v1645_v28 = vpop.f32.mrb[93].mxu1 }
 0x3eb   :  { %1836 = vst [vmem:[#allocation11 + $0x60] sm:$0xff] %v1645_v28 }
 0x3ed   :  { %v2347_v18 = vpop.f32.mrb[94].mxu1 }
 0x3ee   :  { %1839 = vst [vmem:[#allocation11 + $0x78] sm:$0xff] %v2347_v18  ;;  %v1655_v16 = vpop.f32.mrb[95].mxu1 }
 0x3ef   :  { %1838 = vst [vmem:[#allocation11 + $0x70] sm:$0xff] %v1655_v16 }
 0x3f1   :  { %v2350_v24 = vpop.f32.mrb[96].mxu1 }
 0x3f2   :  { %1841 = vst [vmem:[#allocation11 + $0x88] sm:$0xff] %v2350_v24  ;;  %v1665_v36 = vpop.f32.mrb[97].mxu1 }
 0x3f3   :  { %1840 = vst [vmem:[#allocation11 + $0x80] sm:$0xff] %v1665_v36 }
 0x3f5   :  { %v2353_v46 = vpop.f32.mrb[98].mxu1 }
 0x3f6   :  { %1843 = vst [vmem:[#allocation11 + $0x98] sm:$0xff] %v2353_v46  ;;  %v1675_v42 = vpop.f32.mrb[99].mxu1 }
 0x3f7   :  { %1842 = vst [vmem:[#allocation11 + $0x90] sm:$0xff] %v1675_v42 }
 0x3f9   :  { %v2356_v58 = vpop.f32.mrb[100].mxu1 }
 0x3fa   :  { %1845 = vst [vmem:[#allocation11 + $0xa8] sm:$0xff] %v2356_v58  ;;  %v1685_v44 = vpop.f32.mrb[101].mxu1 }
 0x3fb   :  { %1844 = vst [vmem:[#allocation11 + $0xa0] sm:$0xff] %v1685_v44 }
 0x3fd   :  { %v2359_v56 = vpop.f32.mrb[102].mxu1 }
 0x3fe   :  { %1847 = vst [vmem:[#allocation11 + $0xb8] sm:$0xff] %v2359_v56  ;;  %v1695_v57 = vpop.f32.mrb[103].mxu1 }
 0x3ff   :  { %1846 = vst [vmem:[#allocation11 + $0xb0] sm:$0xff] %v1695_v57 }
 0x401   :  { %v2362_v32 = vpop.f32.mrb[104].mxu1 }
 0x402   :  { %1849 = vst [vmem:[#allocation11 + $0xc8] sm:$0xff] %v2362_v32  ;;  %v1705_v11 = vpop.f32.mrb[105].mxu1 }
 0x403   :  { %1848 = vst [vmem:[#allocation11 + $0xc0] sm:$0xff] %v1705_v11 }
 0x405   :  { %v2365_v49 = vpop.f32.mrb[106].mxu1 }
 0x406   :  { %1851 = vst [vmem:[#allocation11 + $0xd8] sm:$0xff] %v2365_v49  ;;  %v1715_v9 = vpop.f32.mrb[107].mxu1 }
 0x407   :  { %1850 = vst [vmem:[#allocation11 + $0xd0] sm:$0xff] %v1715_v9 }
 0x409   :  { %v2368_v6 = vpop.f32.mrb[108].mxu1 }
 0x40a   :  { %1853 = vst [vmem:[#allocation11 + $0xe8] sm:$0xff] %v2368_v6  ;;  %v1725_v1 = vpop.f32.mrb[109].mxu1 }
 0x40b   :  { %1852 = vst [vmem:[#allocation11 + $0xe0] sm:$0xff] %v1725_v1 }
 0x40d   :  { %v2371_v5 = vpop.f32.mrb[110].mxu1 }
 0x40e   :  { %1855 = vst [vmem:[#allocation11 + $0xf8] sm:$0xff] %v2371_v5  ;;  %v1735_v8 = vpop.f32.mrb[111].mxu1 }
 0x40f   :  { %1854 = vst [vmem:[#allocation11 + $0xf0] sm:$0xff] %v1735_v8 }
 0x411   :  { %v2374_v41 = vpop.f32.mrb[112].mxu1 }
 0x412   :  { %1857 = vst [vmem:[#allocation11 + $0x108] sm:$0xff] %v2374_v41  ;;  %v1745_v12 = vpop.f32.mrb[113].mxu1 }
 0x413   :  { %1856 = vst [vmem:[#allocation11 + $0x100] sm:$0xff] %v1745_v12 }
 0x415   :  { %v2377_v26 = vpop.f32.mrb[114].mxu1 }
 0x416   :  { %1859 = vst [vmem:[#allocation11 + $0x118] sm:$0xff] %v2377_v26  ;;  %v1755_v35 = vpop.f32.mrb[115].mxu1 }
 0x417   :  { %1858 = vst [vmem:[#allocation11 + $0x110] sm:$0xff] %v1755_v35 }
 0x419   :  { %v2380_v23 = vpop.f32.mrb[116].mxu1 }
 0x41a   :  { %1861 = vst [vmem:[#allocation11 + $0x128] sm:$0xff] %v2380_v23  ;;  %v1765_v19 = vpop.f32.mrb[117].mxu1 }
 0x41b   :  { %1860 = vst [vmem:[#allocation11 + $0x120] sm:$0xff] %v1765_v19 }
 0x41d   :  { %v2383_v21 = vpop.f32.mrb[118].mxu1 }
 0x41e   :  { %1863 = vst [vmem:[#allocation11 + $0x138] sm:$0xff] %v2383_v21  ;;  %v1775_v51 = vpop.f32.mrb[119].mxu1 }
 0x41f   :  { %1862 = vst [vmem:[#allocation11 + $0x130] sm:$0xff] %v1775_v51 }
 0x421   :  { %v2386_v0 = vpop.f32.mrb[120].mxu1 }
 0x422   :  { %1865 = vst [vmem:[#allocation11 + $0x148] sm:$0xff] %v2386_v0  ;;  %v1785_v30 = vpop.f32.mrb[121].mxu1 }
 0x423   :  { %1864 = vst [vmem:[#allocation11 + $0x140] sm:$0xff] %v1785_v30 }
 0x425   :  { %v2389_v54 = vpop.f32.mrb[122].mxu1 }
 0x426   :  { %1867 = vst [vmem:[#allocation11 + $0x158] sm:$0xff] %v2389_v54  ;;  %v1795_v37 = vpop.f32.mrb[123].mxu1 }
 0x427   :  { %1866 = vst [vmem:[#allocation11 + $0x150] sm:$0xff] %v1795_v37 }
 0x429   :  { %v2392_v48 = vpop.f32.mrb[124].mxu1 }
 0x42a   :  { %1869 = vst [vmem:[#allocation11 + $0x168] sm:$0xff] %v2392_v48  ;;  %v1805_v2 = vpop.f32.mrb[125].mxu1 }
 0x42b   :  { %1868 = vst [vmem:[#allocation11 + $0x160] sm:$0xff] %v1805_v2 }
 0x42d   :  { %v2395_v59 = vpop.f32.mrb[126].mxu1 }
 0x42e   :  { %1871 = vst [vmem:[#allocation11 + $0x178] sm:$0xff] %v2395_v59  ;;  %v1815_v10 = vpop.f32.mrb[127].mxu1 }
 0x42f   :  { %1870 = vst [vmem:[#allocation11 + $0x170] sm:$0xff] %v1815_v10 }
 0x430   :  { %2665 = shalt.err (!%p2662_p8)
}
 0x431   :  { %s2666_s23 = scalar_lea.hbm %s3165_s5, 6144 }
 0x432   :  { %p2667_p9 = scmp.ne.s32.totalorder %s3165_s5, %s2666_s23  ;;  %p2670_p10 = scmp.lt.u32.totalorder %s2666_s23, %s3165_s5 }
 0x434   :  { %p2672_p11 = pnand %p2670_p10, %p2667_p9 }
 0x436   :  { %2675 = shalt.err (!%p2672_p11)
}
 0x437   :  { %1883 = dma.vmem_to_hbm [thread:$0]  %s1878_s19, 6144, %s3165_s5, [#allocation5], %s2685_s28, %s2685_s28, %s2686_s29  }
 0x438   :  { %2682 = dma.done.wait [#allocation5], 6144  }
 0x439   :  { %2683 = vsyncadd [#allocation5], 4294961152 }
 0x43a   :  { %1887 = vsyncpa [#allocation4], 1 }
 0x43b   :  { %1888 = vsyncpa [#allocation7], 1 }
 0x43c   :  { %1889 = vsyncpa [#allocation10], 1 }
 0x43d   :  { %1890 = vsyncpa [#allocation5], 1 }

</bundles_post_ra>
